<compile_context>
chip_gen: v5e
topology: v5e:2x2
jax: 0.10.0
libtpu: 0.0.40
codegen_flags: <defaults>
</compile_context>

<pallas_src>
import functools

import jax
import jax.numpy as jnp
from jax import lax
from jax.experimental import pallas as pl
from jax.experimental.pallas import tpu as pltpu


def _conv_mul2_kernel(x_ref, w_ref, o_ref, *, KH, KW, OH, OW):
    # x_ref: (1, H, W, Cin)   w_ref: (Cout, KH*KW*Cin + 1)   o_ref: (1, Cout, OH*OW)
    x = x_ref[0]                                            # (H, W, Cin) f32

    # im2col: one (OH, OW, Cin) window per (kh, kw) tap, concatenated on the
    # channel (lane) axis; a ones column at the end carries the folded bias.
    cols = [x[kh:kh + OH, kw:kw + OW, :]
            for kh in range(KH) for kw in range(KW)]        # each (OH, OW, Cin)
    cols.append(jnp.ones((OH, OW, 1), x.dtype))             # bias "tap"
    patches = jnp.concatenate(cols, axis=-1)                # (OH, OW, KH*KW*Cin+1)
    patches = patches.reshape(OH * OW, patches.shape[-1])   # (OH*OW, K+1)

    # Single MXU matmul, "nt" contraction over the K lanes:
    #   (Cout, K+1) x (OH*OW, K+1)^T -> (Cout, OH*OW)   (lane-dense result)
    acc = lax.dot_general(
        w_ref[...], patches,
        dimension_numbers=(((1,), (1,)), ((), ())),
        preferred_element_type=jnp.float32)                 # (Cout, OH*OW) f32

    o_ref[0] = acc.astype(o_ref.dtype)


def conv_model_forward(x_nchw, weight_oihw, bias):
    """ConvModel.forward: Conv2d(stride=1, padding=0, bias=True)(x) * 2.

    x_nchw:      (N, Cin, H, W)   float32
    weight_oihw: (Cout, Cin, KH, KW)
    bias:        (Cout,)
    returns:     (N, Cout, OH, OW)
    """
    N, Cin, H, W = x_nchw.shape
    Cout, _, KH, KW = weight_oihw.shape
    OH, OW = H - KH + 1, W - KW + 1
    K1 = KH * KW * Cin + 1

    # NHWC activations (channels on the lane axis inside the kernel).
    x_nhwc = jnp.transpose(x_nchw, (0, 2, 3, 1))             # (N, H, W, Cin)

    # Weight matrix with column order (kh, kw, cin) matching the im2col patch
    # columns, bias folded as the last column, and the module's *2 prescaled.
    w_mat = jnp.transpose(weight_oihw, (0, 2, 3, 1)).reshape(Cout, KH * KW * Cin)
    w_aug = jnp.concatenate([w_mat, bias[:, None]], axis=1) * 2.0   # (Cout, K1)

    kernel = functools.partial(_conv_mul2_kernel, KH=KH, KW=KW, OH=OH, OW=OW)

    out_flat = pl.pallas_call(
        kernel,
        out_shape=jax.ShapeDtypeStruct((N, Cout, OH * OW), x_nchw.dtype),
        grid=(N,),
        in_specs=[
            pl.BlockSpec((1, H, W, Cin), lambda n: (n, 0, 0, 0)),
            pl.BlockSpec((Cout, K1), lambda n: (0, 0)),
        ],
        out_specs=pl.BlockSpec((1, Cout, OH * OW), lambda n: (n, 0, 0)),
        compiler_params=pltpu.CompilerParams(
            dimension_semantics=("parallel",),
            vmem_limit_bytes=32 * 1024 * 1024,   # safe on v5e/v6e (128 MiB) and v7x (64 MiB/TC)
        ),
    )(x_nhwc, w_aug)

    # Free reshape (no transpose, no extra HBM pass) back to NCHW.
    return out_flat.reshape(N, Cout, OH, OW)


if __name__ == "__main__":
    # Small shapes consistent with the module: N=2, Cin=4, H=W=16, Cout=8, k=3.
    key = jax.random.PRNGKey(0)
    kx, kw, kb = jax.random.split(key, 3)

    N, Cin, H, W = 2, 4, 16, 16
    Cout, K = 8, 3

    x = jax.random.normal(kx, (N, Cin, H, W), dtype=jnp.float32)
    # Deterministic parameter init (PyTorch-style uniform bound 1/sqrt(fan_in)).
    fan_in = Cin * K * K
    bound = 1.0 / (fan_in ** 0.5)
    weight = jax.random.uniform(kw, (Cout, Cin, K, K), jnp.float32, -bound, bound)
    bias = jax.random.uniform(kb, (Cout,), jnp.float32, -bound, bound)

    out = conv_model_forward(x, weight, bias)
    out = jax.block_until_ready(out)

    # Reference check with XLA's conv.
    ref = lax.conv_general_dilated(
        x, weight, window_strides=(1, 1), padding="VALID",
        dimension_numbers=("NCHW", "OIHW", "NCHW"))
    ref = (ref + bias[None, :, None, None]) * 2.0

    assert out.shape == (N, Cout, H - K + 1, W - K + 1), out.shape
    assert jnp.allclose(out, ref, atol=1e-4, rtol=1e-4), float(
        jnp.max(jnp.abs(out - ref)))

    print("KERNEL_OK")
</pallas_src>

<mosaic_0001>
module attributes {stable_mosaic.version = 11 : i64} {
  func.func @_conv_mul2_kernel(%arg0: i32, %arg1: memref<1x16x16x4xf32, #tpu.memory_space<vmem>>, %arg2: memref<8x37xf32, #tpu.memory_space<vmem>>, %arg3: memref<1x8x196xf32, #tpu.memory_space<vmem>>) attributes {dimension_semantics = [#tpu.dimension_semantics<parallel>], iteration_bounds = array<i64: 2>, scalar_prefetch = 0 : i64, scratch_operands = 0 : i64, tpu.core_type = #tpu.core_type<tc>, window_params = [{transform_indices = @transform_0, window_bounds = array<i64: 1, 16, 16, 4>}, {pipeline_mode = #tpu.pipeline_mode<synchronous>, transform_indices = @transform_1, window_bounds = array<i64: 8, 37>}, {transform_indices = @transform_2, window_bounds = array<i64: 1, 8, 196>}]} {
    %c0 = arith.constant 0 : index
    %c0_0 = arith.constant 0 : index
    %c0_1 = arith.constant 0 : index
    %c0_2 = arith.constant 0 : index
    %0 = vector.load %arg1[%c0, %c0_0, %c0_1, %c0_2] : memref<1x16x16x4xf32, #tpu.memory_space<vmem>>, vector<1x16x16x4xf32>
    %1 = vector.shape_cast %0 : vector<1x16x16x4xf32> to vector<16x16x4xf32>
    %2 = vector.extract_strided_slice %1 {offsets = [0, 0, 0], sizes = [14, 14, 4], strides = [1, 1, 1]} : vector<16x16x4xf32> to vector<14x14x4xf32>
    %3 = vector.extract_strided_slice %1 {offsets = [0, 1, 0], sizes = [14, 14, 4], strides = [1, 1, 1]} : vector<16x16x4xf32> to vector<14x14x4xf32>
    %4 = vector.extract_strided_slice %1 {offsets = [0, 2, 0], sizes = [14, 14, 4], strides = [1, 1, 1]} : vector<16x16x4xf32> to vector<14x14x4xf32>
    %5 = vector.extract_strided_slice %1 {offsets = [1, 0, 0], sizes = [14, 14, 4], strides = [1, 1, 1]} : vector<16x16x4xf32> to vector<14x14x4xf32>
    %6 = vector.extract_strided_slice %1 {offsets = [1, 1, 0], sizes = [14, 14, 4], strides = [1, 1, 1]} : vector<16x16x4xf32> to vector<14x14x4xf32>
    %7 = vector.extract_strided_slice %1 {offsets = [1, 2, 0], sizes = [14, 14, 4], strides = [1, 1, 1]} : vector<16x16x4xf32> to vector<14x14x4xf32>
    %8 = vector.extract_strided_slice %1 {offsets = [2, 0, 0], sizes = [14, 14, 4], strides = [1, 1, 1]} : vector<16x16x4xf32> to vector<14x14x4xf32>
    %9 = vector.extract_strided_slice %1 {offsets = [2, 1, 0], sizes = [14, 14, 4], strides = [1, 1, 1]} : vector<16x16x4xf32> to vector<14x14x4xf32>
    %10 = vector.extract_strided_slice %1 {offsets = [2, 2, 0], sizes = [14, 14, 4], strides = [1, 1, 1]} : vector<16x16x4xf32> to vector<14x14x4xf32>
    %cst = arith.constant 1.000000e+00 : f32
    %11 = vector.broadcast %cst : f32 to vector<14x14x1xf32>
    %12 = tpu.concatenate %2, %3, %4, %5, %6, %7, %8, %9, %10, %11 in 2 : vector<14x14x4xf32>, vector<14x14x4xf32>, vector<14x14x4xf32>, vector<14x14x4xf32>, vector<14x14x4xf32>, vector<14x14x4xf32>, vector<14x14x4xf32>, vector<14x14x4xf32>, vector<14x14x4xf32>, vector<14x14x1xf32> -> vector<14x14x37xf32>
    %13 = vector.shape_cast %12 : vector<14x14x37xf32> to vector<196x37xf32>
    %c0_3 = arith.constant 0 : index
    %c0_4 = arith.constant 0 : index
    %14 = vector.load %arg2[%c0_3, %c0_4] : memref<8x37xf32, #tpu.memory_space<vmem>>, vector<8x37xf32>
    %cst_5 = arith.constant dense<0.000000e+00> : vector<8x196xf32>
    %15 = tpu.matmul %14, %13, %cst_5 {dimension_numbers = #tpu.dot_dimension_numbers<[1], [1], [0], [0], [0, 0, 1, 0], [], []>} : vector<8x37xf32>, vector<196x37xf32>, vector<8x196xf32> -> vector<8x196xf32>
    %c0_6 = arith.constant 0 : index
    %c0_7 = arith.constant 0 : index
    %c0_8 = arith.constant 0 : index
    %16 = vector.load %arg3[%c0_6, %c0_7, %c0_8] : memref<1x8x196xf32, #tpu.memory_space<vmem>>, vector<1x8x196xf32>
    %17 = vector.shape_cast %16 : vector<1x8x196xf32> to vector<8x196xf32>
    %18 = vector.shape_cast %15 : vector<8x196xf32> to vector<1x8x196xf32>
    tpu.vector_store %arg3[%c0_6, %c0_7, %c0_8], %18 {strides = array<i32>} : memref<1x8x196xf32, #tpu.memory_space<vmem>>, vector<1x8x196xf32>,
    return
  }
  func.func @transform_0(%arg0: i32) -> (i32, i32, i32, i32) {
    %c0_i32 = arith.constant 0 : i32
    %c0_i32_0 = arith.constant 0 : i32
    %c0_i32_1 = arith.constant 0 : i32
    %c0_i32_2 = arith.constant 0 : i32
    return %arg0, %c0_i32, %c0_i32_0, %c0_i32_1 : i32, i32, i32, i32
  }
  func.func @transform_1(%arg0: i32) -> (i32, i32) {
    %c0_i32 = arith.constant 0 : i32
    %c0_i32_0 = arith.constant 0 : i32
    %c0_i32_1 = arith.constant 0 : i32
    return %c0_i32, %c0_i32_0 : i32, i32
  }
  func.func @transform_2(%arg0: i32) -> (i32, i32, i32) {
    %c0_i32 = arith.constant 0 : i32
    %c0_i32_0 = arith.constant 0 : i32
    %c0_i32_1 = arith.constant 0 : i32
    return %arg0, %c0_i32, %c0_i32_0 : i32, i32, i32
  }
}

</mosaic_0001>

<bundles_post_ra>
// kernel: tpu_custom_call.1
= control target key start
LH: loop header
LB: loop body
LE: loop exit
PB: predicated region body
PF: predicated region fallthrough
CT: control target
= control target key end

     0   :  { %7 = vsyncpa [#allocation3], 0  ;;  %s3464_s0 = inlined_call_operand.vmem [shape: f32[2,16,16,4], index: 0, kind: input, shape index: {}]   ;;  %s3465_s1 = inlined_call_operand.vmem [shape: f32[8,37], index: 1, kind: input, shape index: {}]   ;;  %s3466_s2 = inlined_call_operand.hbm [shape: f32[2,8,196], index: 2, kind: output, shape index: {}]  }
   0x1   :  { %9 = vsyncpa [#allocation3 + $0x1], 0  ;;  %s1837_s9 = smov 0   ;;  %s1839_s10 = smov 0  }
   0x2   :  { %s1841_s11 = smov 0   ;;  %s1843_s12 = smov 0  }
   0x3 LB: > { %s1858_s13 = sadd.s32 4294967295, %s1812_s12   ;;  %s1639_s14 = sadd.s32 4294967294, %s1812_s12   ;;  %s1812_s12 = sphi %s1843_s12, %s3765_s12   ;;  %s1808_s11 = sphi %s1841_s11, %s3764_s11   ;;  %s1804_s10 = sphi %s1839_s10, %s3763_s10   ;;  %s1800_s9 = sphi %s1837_s9, %s3762_s9  }
   0x4   : > { %s1862_s15 = sadd.s32 1, %s1812_s12   ;;  %s69_s16 = sadd.s32 1, %s1808_s11 }
   0x5   : > { %s66_s17 = ssub.s32 %s1812_s12, %s1862_s15  ;;  %p79_p0 = scmp.ne.s32.totalorder %s1808_s11, %s1804_s10 }
   0x6   : > { %p67_p1 = scmp.eq.s32.totalorder %s66_s17, 0  ;;  %p80_p2 = scmp.eq.s32.totalorder %s1858_s13, 1 }
   0x7   : > { %p85_p3 = scmp.ne.s32.totalorder %s1804_s10, %s1800_s9  ;;  %p86_p4 = scmp.eq.s32.totalorder %s1639_s14, 1 }
   0x8   : > { %s1873_s18 = scalar_select %p67_p1, %s1808_s11, %s69_s16  }
   0x9   : > { %p1875_p5 = por %p80_p2, %p79_p0  ;;  %p1879_p6 = por %p86_p4, %p85_p3 }
   0xa   : > { %p1642_p7 = scmp.ge.s32.totalorder %s1812_s12, 1  ;;  %p115_p8 = scmp.lt.s32.totalorder %s1812_s12, 3 }
   0xc   : > { %p116_p9 = pnand %p1642_p7, %p115_p8 }
   0xe   : > { %119 = sbr.rel (%p116_p9) target bundleno = 918 (0x396), region = 28 }
  0x13   : > { %p137_p10 = scmp.lt.s32.totalorder %s1858_s13, 1  ;;  %s1814_s26 = smov 4   ;;  %vm202_vm0 = vcmask 1046528   ;;  %vm329_vm1 = vcmask 1045504   ;;  %vm976_vm2 = vcmask 31744   ;;  %vm1005_vm3 = vcmask 64512  }
  0x14   : > { %s1815_s27 = smov 8   ;;  %s1816_s28 = smov 12   ;;  %vm1034_vm4 = vcmask 97280   ;;  %vm1063_vm5 = vcmask 130048   ;;  %vm1092_vm6 = vcmask 162816   ;;  %vm1121_vm7 = vcmask 195584  }
  0x15   : > { %s138_s21 = scalar_select %p137_p10, %s1858_s13, 1  ;;  %vm1150_vm8 = vcmask 228352   ;;  %vm1179_vm9 = vcmask 261120   ;;  %vm1208_vm10 = vcmask 293888   ;;  %vm1466_vm11 = vcmask 302080  }
  0x16   : > { %s1817_s29 = smov 16   ;;  %s1818_s30 = smov 20   ;;  %vm1561_vm12 = vcmask 556032  }
  0x17   : > { %s1678_s22 = sshll.u32 %s138_s21, 8  ;;  %s1819_s3 = smov 28  }
  0x18   : > { %s1890_s25 = scalar_lea.vmem %s3464_s0, %s1678_s22  ;;  %s1820_s4 = smov 24  }
  0x19   : > { %v1893_v0 = vld [vmem:[%s1890_s25 + $0x28] sm:$0xff]  ;;  %v1896_v1 = vld [vmem:[%s1890_s25 + $0x18] sm:$0xff]  ;;  %v1909_v6 = vld [vmem:[%s1890_s25 + $0x20] sm:$0xff]  ;;  %s1821_s5 = smov 32   ;;  %s134_s8 = sand.u32 1, %s1804_s10  }
  0x1a   : > { %3542 = vst [vmem:[#allocation5_spill] sm:$0xff] %v1896_v1  ;;  %v1899_v2 = vld [vmem:[%s1890_s25 + $0x8] sm:$0xff]  ;;  %v1902_v3 = vrot.slane %v1893_v0, 1  ;;  %v1905_v4 = vrot.slane %v1896_v1, 1  ;;  %v1912_v7 = vld [vmem:[%s1890_s25 + $0x10] sm:$0xff]  ;;  %v1915_v8 = vld [vmem:[%s1890_s25] sm:$0xff] }
  0x1b   : > { %v204_v5 = vrot.slane %v1899_v2, 1  ;;  %3543 = vst [vmem:[#allocation6_spill] sm:$0xff] %v1912_v7  ;;  %v209_v9 = vrot.slane %v1909_v6, 1  ;;  %v206_v10 = vrot.slane %v1912_v7, 1  ;;  %v203_v11 = vrot.slane %v1915_v8, 1  ;;  %v1935_v15 = vld [vmem:[%s1890_s25 + $0x40] sm:$0xff] }
  0x1c   : > { %3544 = vst [vmem:[#allocation7_spill] sm:$0xff] %v1915_v8  ;;  %255 = vrot.lane.b32.xlu2 %v1902_v3, %s1814_s26  ;;  %251 = vrot.lane.b32.xlu1 %v1905_v4, %s1814_s26  ;;  %v1938_v16 = vld [vmem:[%s1890_s25 + $0x48] sm:$0xff]  ;;  %v1941_v17 = vld [vmem:[%s1890_s25 + $0x38] sm:$0xff]  ;;  %v215_v19 = vrot.slane %v1935_v15, 1  ;;  %s1643_s14 = sshll.u32 %s134_s8, 4  ;;  %s1679_s17 = sshll.u32 %s1858_s13, 4 }
  0x1d   : > { %247 = vrot.lane.b32.xlu0 %v204_v5, %s1814_s26  ;;  %v1927_v12 = vsel %vm202_vm0, %v209_v9, %v1902_v3  ;;  %v1931_v13 = vsel %vm202_vm0, %v206_v10, %v1905_v4  ;;  %v205_v14 = vsel %vm202_vm0, %v203_v11, %v204_v5  ;;  %v1944_v18 = vld [vmem:[%s1890_s25 + $0x30] sm:$0xff]  ;;  %v1953_v20 = vrot.slane %v1938_v16, 1  ;;  %v1968_v25 = vld [vmem:[%s1890_s25 + $0x58] sm:$0xff]  ;;  %v1994_v32 = vld [vmem:[%s1890_s25 + $0x68] sm:$0xff]  ;;  %s136_s16 = scalar_lea.vmem [#allocation2], %s1643_s14  ;;  %s1575_s23 = scalar_lea.hbm %s3466_s2, %s1679_s17 }
  0x1e   : > { %v1956_v21 = vrot.slane %v1941_v17, 1  ;;  %v212_v22 = vrot.slane %v1944_v18, 1  ;;  %v1971_v26 = vld [vmem:[%s1890_s25 + $0x50] sm:$0xff]  ;;  %v1980_v27 = vrot.slane %v1968_v25, 1  ;;  %v1991_v31 = vld [vmem:[%s1890_s25 + $0x78] sm:$0xff]  ;;  %v1997_v33 = vld [vmem:[%s1890_s25 + $0x60] sm:$0xff] }
  0x1f   : > { %v1961_v23 = vsel %vm202_vm0, %v215_v19, %v1953_v20  ;;  %v218_v28 = vrot.slane %v1971_v26, 1  ;;  %v1988_v30 = vld [vmem:[%s1890_s25 + $0x70] sm:$0xff]  ;;  %3545 = vst [vmem:[#allocation8_spill] sm:$0xff] %v1991_v31  ;;  %v2007_v35 = vrot.slane %v1991_v31, 1  ;;  %v2010_v36 = vrot.slane %v1994_v32, 1  ;;  %v2022_v40 = vld [vmem:[%s1890_s25 + $0x88] sm:$0xff] }
  0x20   : > { %v1965_v24 = vsel %vm202_vm0, %v212_v22, %v1956_v21  ;;  %v224_v34 = vrot.slane %v1988_v30, 1  ;;  %v221_v37 = vrot.slane %v1997_v33, 1  ;;  %3547 = vst [vmem:[#allocation10_spill] sm:$0xff] %v2022_v40  ;;  %v2025_v41 = vld [vmem:[%s1890_s25 + $0x80] sm:$0xff]  ;;  %v2034_v42 = vrot.slane %v2022_v40, 1  ;;  %v2045_v46 = vld [vmem:[%s1890_s25 + $0xa8] sm:$0xff] }
  0x21   : > { %v1985_v29 = vsel %vm202_vm0, %v218_v28, %v1980_v27  ;;  %3546 = vst [vmem:[#allocation9_spill] sm:$0xff] %v2007_v35  ;;  %v227_v43 = vrot.slane %v2025_v41, 1  ;;  %v2042_v45 = vld [vmem:[%s1890_s25 + $0xa0] sm:$0xff]  ;;  %v2048_v47 = vld [vmem:[%s1890_s25 + $0x98] sm:$0xff]  ;;  %v2051_v48 = vld [vmem:[%s1890_s25 + $0x90] sm:$0xff]  ;;  %v2061_v50 = vrot.slane %v2045_v46, 1 }
  0x22   : > { %v2015_v38 = vsel %vm202_vm0, %v224_v34, %v2007_v35  ;;  %v2019_v39 = vsel %vm202_vm0, %v221_v37, %v2010_v36  ;;  %3548 = vst [vmem:[#allocation11_spill] sm:$0xff] %v2025_v41  ;;  %v233_v49 = vrot.slane %v2042_v45, 1  ;;  %v2064_v51 = vrot.slane %v2048_v47, 1  ;;  %v2076_v55 = vld [vmem:[%s1890_s25 + $0xb8] sm:$0xff]  ;;  %v2079_v56 = vld [vmem:[%s1890_s25 + $0xb0] sm:$0xff]  ;;  %v2102_v62 = vld [vmem:[%s1890_s25 + $0xc8] sm:$0xff] }
  0x23   : > { %3549 = vst [vmem:[#allocation12_spill] sm:$0xff] %v2034_v42  ;;  %v2039_v44 = vsel %vm202_vm0, %v227_v43, %v2034_v42  ;;  %v230_v52 = vrot.slane %v2051_v48, 1  ;;  %v2088_v57 = vrot.slane %v2076_v55, 1  ;;  %v236_v58 = vrot.slane %v2079_v56, 1  ;;  %v2096_v60 = vld [vmem:[%s1890_s25 + $0xd0] sm:$0xff]  ;;  %v2099_v61 = vld [vmem:[%s1890_s25 + $0xd8] sm:$0xff] }
  0x24   : > { %253 = vrot.lane.b32.xlu2 %v1927_v12, %s1814_s26  ;;  %249 = vrot.lane.b32.xlu1 %v1931_v13, %s1814_s26  ;;  %3550 = vst [vmem:[#allocation13_spill] sm:$0xff] %v2039_v44  ;;  %v2069_v53 = vsel %vm202_vm0, %v233_v49, %v2061_v50  ;;  %v2105_v63 = vld [vmem:[%s1890_s25 + $0xc0] sm:$0xff]  ;;  %v242_v5 = vrot.slane %v2096_v60, 1  ;;  %v2115_v9 = vrot.slane %v2099_v61, 1  ;;  %v2118_v10 = vrot.slane %v2102_v62, 1  ;;  %s1577_s24 = sshll.u32 %s136_s16, 4  ;;  %s1578_s24 = int_to_ptr.vmem [resolvable:$true] %s1577_s24 }
  0x25   : > { %245 = vrot.lane.b32.xlu0 %v205_v14, %s1814_s26  ;;  %3551 = vst [vmem:[#allocation14_spill] sm:$0xff] %v2042_v45  ;;  %v2073_v54 = vsel %vm202_vm0, %v230_v52, %v2064_v51  ;;  %v2093_v59 = vsel %vm202_vm0, %v236_v58, %v2088_v57  ;;  %v239_v11 = vrot.slane %v2105_v63, 1  ;;  %v331_v22 = vrot.slane %v1899_v2, 2 }
  0x26   : > { %3552 = vst [vmem:[#allocation15_spill] sm:$0xff] %v2048_v47  ;;  %v2123_v14 = vsel %vm202_vm0, %v242_v5, %v2115_v9  ;;  %v330_v28 = vrot.slane %v1915_v8, 2  ;;  %v336_v37 = vrot.slane %v1909_v6, 2  ;;  %v2144_v43 = vrot.slane %v1893_v0, 2 }
  0x27   : > { %3553 = vst [vmem:[#allocation16_spill] sm:$0xff] %v2051_v48  ;;  %v2127_v19 = vsel %vm202_vm0, %v239_v11, %v2118_v10  ;;  %v2147_v2 = vrot.slane %v1896_v1, 2  ;;  %v333_v49 = vrot.slane %v1912_v7, 2  ;;  %v2165_v5 = vrot.slane %v1941_v17, 2 }
  0x28   : > { %3554 = vst [vmem:[#allocation17_spill] sm:$0xff] %v2061_v50  ;;  %v332_v34 = vsel %vm329_vm1, %v330_v28, %v331_v22  ;;  %v2152_v52 = vsel %vm329_vm1, %v336_v37, %v2144_v43  ;;  %v339_v11 = vrot.slane %v1944_v18, 2  ;;  %v345_v28 = vrot.slane %v1971_v26, 2 }
  0x29   : > { %3555 = vst [vmem:[#allocation18_spill] sm:$0xff] %v2064_v51  ;;  %v2156_v58 = vsel %vm329_vm1, %v333_v49, %v2147_v2  ;;  %v2185_v49 = vrot.slane %v1938_v16, 2 }
  0x2a   : > { %3556 = vst [vmem:[#allocation19_spill] sm:$0xff] %v2069_v53 }
  0x2b   : > { %3557 = vst [vmem:[#allocation20_spill] sm:$0xff] %v2088_v57 }
  0x2c   : > { %261 = vrot.lane.b32.xlu2 %v1961_v23, %s1814_s26  ;;  %259 = vrot.lane.b32.xlu1 %v1956_v21, %s1814_s26  ;;  %3558 = vst [vmem:[#allocation21_spill] sm:$0xff] %v2093_v59 }
  0x2d   : > { %257 = vrot.lane.b32.xlu0 %v1965_v24, %s1814_s26  ;;  %3559 = vst [vmem:[#allocation22_spill] sm:$0xff] %v2099_v61 }
  0x2e   : > { %3560 = vst [vmem:[#allocation23_spill] sm:$0xff] %v2115_v9 }
  0x2f   : > { %3561 = vst [vmem:[#allocation24_spill] sm:$0xff] %v2118_v10 }
  0x30   : > { %3562 = vst [vmem:[#allocation25_spill] sm:$0xff] %v2123_v14 }
  0x31   : > { %3563 = vst [vmem:[#allocation26_spill] sm:$0xff] %v2127_v19 }
  0x32   : > { %3564 = vst [vmem:[#allocation27_spill] sm:$0xff] %v2144_v43 }
  0x33   : > { %3565 = vst [vmem:[#allocation28_spill] sm:$0xff] %v2152_v52 }
  0x34   : > { %267 = vrot.lane.b32.xlu2 %v1980_v27, %s1814_s26  ;;  %265 = vrot.lane.b32.xlu1 %v1985_v29, %s1814_s26  ;;  %3566 = vst [vmem:[#allocation29_spill] sm:$0xff] %v2165_v5 }
  0x35   : > { %263 = vrot.lane.b32.xlu0 %v1953_v20, %s1814_s26  ;;  %3569 = vst [vmem:[#allocation32_spill] sm:$0xff] %v2185_v49 }
  0x3c   : > { %273 = vrot.lane.b32.xlu2 %v2015_v38, %s1814_s26  ;;  %271 = vrot.lane.b32.xlu1 %v2010_v36, %s1814_s26 }
  0x3d   : > { %269 = vrot.lane.b32.xlu0 %v2019_v39, %s1814_s26 }
  0x44   : > { %279 = vrot.lane.b32.xlu2 %v2034_v42, %s1814_s26  ;;  %277 = vrot.lane.b32.xlu1 %v2039_v44, %s1814_s26 }
  0x45   : > { %275 = vrot.lane.b32.xlu0 %v2007_v35, %s1814_s26 }
  0x4c   : > { %285 = vrot.lane.b32.xlu2 %v2069_v53, %s1814_s26  ;;  %283 = vrot.lane.b32.xlu1 %v2064_v51, %s1814_s26 }
  0x4d   : > { %281 = vrot.lane.b32.xlu0 %v2073_v54, %s1814_s26 }
  0x54   : > { %291 = vrot.lane.b32.xlu2 %v2088_v57, %s1814_s26  ;;  %289 = vrot.lane.b32.xlu1 %v2093_v59, %s1814_s26 }
  0x55   : > { %287 = vrot.lane.b32.xlu0 %v2061_v50, %s1814_s26 }
  0x5c   : > { %297 = vrot.lane.b32.xlu2 %v2123_v14, %s1814_s26  ;;  %295 = vrot.lane.b32.xlu1 %v2118_v10, %s1814_s26 }
  0x5d   : > { %293 = vrot.lane.b32.xlu0 %v2127_v19, %s1814_s26 }
  0x64   : > { %374 = vrot.lane.b32.xlu2 %v331_v22, %s1815_s27  ;;  %372 = vrot.lane.b32.xlu1 %v332_v34, %s1815_s27  ;;  %v2170_v22 = vsel %vm329_vm1, %v339_v11, %v2165_v5  ;;  %v2180_v34 = vrot.slane %v1968_v25, 2  ;;  %v342_v11 = vrot.slane %v1935_v15, 2 }
  0x65   : > { %299 = vrot.lane.b32.xlu0 %v2115_v9, %s1814_s26  ;;  %s1564_s26 = scalar_lea.sflag [#allocation3], %s134_s8 }
  0x66   : > { %3567 = vst [vmem:[#allocation30_spill] sm:$0xff] %v2180_v34  ;;  %v2190_v8 = vsel %vm329_vm1, %v345_v28, %v2180_v34 }
  0x67   : > { %3570 = vst [vmem:[#allocation33_spill] sm:$0xff] %v2190_v8 }
  0x6c   : > { %380 = vrot.lane.b32.xlu2 %v2152_v52, %s1815_s27  ;;  %378 = vrot.lane.b32.xlu1 %v2147_v2, %s1815_s27  ;;  %v348_v52 = vrot.slane %v1997_v33, 2 }
  0x6d   : > { %376 = vrot.lane.b32.xlu0 %v2156_v58, %s1815_s27 }
  0x74   : > { %386 = vrot.lane.b32.xlu2 %v2165_v5, %s1815_s27  ;;  %384 = vrot.lane.b32.xlu1 %v2170_v22, %s1815_s27  ;;  %v2194_v5 = vsel %vm329_vm1, %v342_v11, %v2185_v49 }
  0x75   : > { %382 = vrot.lane.b32.xlu0 %v2144_v43, %s1815_s27  ;;  %3571 = vst [vmem:[#allocation34_spill] sm:$0xff] %v2194_v5 }
  0x76   : > { %v2182_v37 = vpop.permute.xlu2 %255 }
  0x77   : > { %3568 = vst [vmem:[#allocation31_spill] sm:$0xff] %v2182_v37  ;;  %v2203_v37 = vrot.slane %v1994_v32, 2 }
  0x79   : > { %3572 = vst [vmem:[#allocation35_spill] sm:$0xff] %v2203_v37  ;;  %v2210_v11 = vsel %vm329_vm1, %v348_v52, %v2203_v37  ;;  %v351_v52 = vrot.slane %v1988_v30, 2 }
  0x7a   : > { %3574 = vst [vmem:[#allocation37_spill] sm:$0xff] %v2210_v11 }
  0x7c   : > { %392 = vrot.lane.b32.xlu2 %v2190_v8, %s1815_s27  ;;  %390 = vrot.lane.b32.xlu1 %v2185_v49, %s1815_s27  ;;  %v354_v8 = vrot.slane %v2025_v41, 2 }
  0x7d   : > { %388 = vrot.lane.b32.xlu0 %v2194_v5, %s1815_s27  ;;  %v2220_v5 = vrot.slane %v2022_v40, 2 }
  0x7e   : > { %v2206_v28 = vpop.permute.xlu2 %253 }
  0x7f   : > { %3573 = vst [vmem:[#allocation36_spill] sm:$0xff] %v2206_v28  ;;  %v2225_v28 = vrot.slane %v1991_v31, 2 }
  0x80   : > { %3575 = vst [vmem:[#allocation38_spill] sm:$0xff] %v2220_v5 }
  0x81   : > { %3577 = vst [vmem:[#allocation40_spill] sm:$0xff] %v2225_v28 }
  0x84   : > { %398 = vrot.lane.b32.xlu2 %v2203_v37, %s1815_s27  ;;  %396 = vrot.lane.b32.xlu1 %v2210_v11, %s1815_s27  ;;  %v2230_v37 = vsel %vm329_vm1, %v354_v8, %v2220_v5  ;;  %v2234_v11 = vsel %vm329_vm1, %v351_v52, %v2225_v28 }
  0x85   : > { %394 = vrot.lane.b32.xlu0 %v2180_v34, %s1815_s27  ;;  %3578 = vst [vmem:[#allocation41_spill] sm:$0xff] %v2230_v37  ;;  %v357_v34 = vrot.slane %v2051_v48, 2 }
  0x86   : > { %v2222_v49 = vpop.permute.xlu2 %261  ;;  %3579 = vst [vmem:[#allocation42_spill] sm:$0xff] %v2234_v11 }
  0x87   : > { %3576 = vst [vmem:[#allocation39_spill] sm:$0xff] %v2222_v49  ;;  %v2243_v49 = vrot.slane %v2048_v47, 2 }
  0x89   : > { %3580 = vst [vmem:[#allocation43_spill] sm:$0xff] %v2243_v49 }
  0x8c   : > { %404 = vrot.lane.b32.xlu2 %v2230_v37, %s1815_s27  ;;  %402 = vrot.lane.b32.xlu1 %v2225_v28, %s1815_s27  ;;  %v2254_v37 = vsel %vm329_vm1, %v357_v34, %v2243_v49  ;;  %v363_v28 = vrot.slane %v2079_v56, 2  ;;  %v2271_v34 = vrot.slane %v2045_v46, 2 }
  0x8d   : > { %400 = vrot.lane.b32.xlu0 %v2234_v11, %s1815_s27  ;;  %3584 = vst [vmem:[#allocation47_spill] sm:$0xff] %v2254_v37 }
  0x8e   : > { %v2246_v8 = vpop.permute.xlu2 %267  ;;  %v2248_v43 = vpop.permute.xlu1 %251  ;;  %3588 = vst [vmem:[#allocation51_spill] sm:$0xff] %v2271_v34 }
  0x8f   : > { %3581 = vst [vmem:[#allocation44_spill] sm:$0xff] %v2246_v8  ;;  %v2250_v52 = vpop.permute.xlu0 %247  ;;  %v2264_v8 = vrot.slane %v2076_v55, 2 }
  0x90   : > { %3582 = vst [vmem:[#allocation45_spill] sm:$0xff] %v2248_v43 }
  0x91   : > { %3583 = vst [vmem:[#allocation46_spill] sm:$0xff] %v2250_v52 }
  0x92   : > { %3585 = vst [vmem:[#allocation48_spill] sm:$0xff] %v2264_v8 }
  0x94   : > { %410 = vrot.lane.b32.xlu2 %v2243_v49, %s1815_s27  ;;  %408 = vrot.lane.b32.xlu1 %v2254_v37, %s1815_s27  ;;  %v360_v49 = vrot.slane %v2042_v45, 2  ;;  %v2278_v37 = vsel %vm329_vm1, %v363_v28, %v2264_v8 }
  0x95   : > { %406 = vrot.lane.b32.xlu0 %v2220_v5, %s1815_s27  ;;  %3590 = vst [vmem:[#allocation53_spill] sm:$0xff] %v2278_v37 }
  0x96   : > { %v2266_v43 = vpop.permute.xlu2 %273  ;;  %v2268_v52 = vpop.permute.xlu1 %249  ;;  %v2282_v5 = vsel %vm329_vm1, %v360_v49, %v2271_v34 }
  0x97   : > { %3586 = vst [vmem:[#allocation49_spill] sm:$0xff] %v2266_v43  ;;  %v2274_v11 = vpop.permute.xlu0 %245  ;;  %v2291_v43 = vrot.slane %v2102_v62, 2 }
  0x98   : > { %3587 = vst [vmem:[#allocation50_spill] sm:$0xff] %v2268_v52  ;;  %v366_v52 = vrot.slane %v2105_v63, 2 }
  0x99   : > { %3589 = vst [vmem:[#allocation52_spill] sm:$0xff] %v2274_v11 }
  0x9a   : > { %3591 = vst [vmem:[#allocation54_spill] sm:$0xff] %v2282_v5 }
  0x9b   : > { %3592 = vst [vmem:[#allocation55_spill] sm:$0xff] %v2291_v43 }
  0x9c   : > { %416 = vrot.lane.b32.xlu2 %v2278_v37, %s1815_s27  ;;  %414 = vrot.lane.b32.xlu1 %v2271_v34, %s1815_s27  ;;  %v2302_v37 = vsel %vm329_vm1, %v366_v52, %v2291_v43 }
  0x9d   : > { %412 = vrot.lane.b32.xlu0 %v2282_v5, %s1815_s27  ;;  %3595 = vst [vmem:[#allocation58_spill] sm:$0xff] %v2302_v37  ;;  %v2315_v5 = vrot.slane %v2099_v61, 2 }
  0x9e   : > { %v2294_v28 = vpop.permute.xlu2 %279  ;;  %v2296_v11 = vpop.permute.xlu1 %259 }
  0x9f   : > { %3593 = vst [vmem:[#allocation56_spill] sm:$0xff] %v2294_v28  ;;  %v2298_v49 = vpop.permute.xlu0 %257 }
  0xa0   : > { %3594 = vst [vmem:[#allocation57_spill] sm:$0xff] %v2298_v49  ;;  %v369_v49 = vrot.slane %v2096_v60, 2 }
  0xa1   : > { %3598 = vst [vmem:[#allocation61_spill] sm:$0xff] %v2315_v5 }
  0xa4   : > { %422 = vrot.lane.b32.xlu2 %v2291_v43, %s1815_s27  ;;  %420 = vrot.lane.b32.xlu1 %v2302_v37, %s1815_s27  ;;  %v2322_v43 = vsel %vm329_vm1, %v369_v49, %v2315_v5 }
  0xa5   : > { %418 = vrot.lane.b32.xlu0 %v2264_v8, %s1815_s27  ;;  %3600 = vst [vmem:[#allocation63_spill] sm:$0xff] %v2322_v43 }
  0xa6   : > { %v2310_v34 = vpop.permute.xlu2 %285  ;;  %v2312_v28 = vpop.permute.xlu1 %265 }
  0xa7   : > { %3596 = vst [vmem:[#allocation59_spill] sm:$0xff] %v2310_v34  ;;  %v2318_v52 = vpop.permute.xlu0 %263 }
  0xa8   : > { %3597 = vst [vmem:[#allocation60_spill] sm:$0xff] %v2312_v28 }
  0xa9   : > { %3599 = vst [vmem:[#allocation62_spill] sm:$0xff] %v2318_v52 }
  0xac   : > { %458 = vrot.lane.b32.xlu2 %v1912_v7, %s1816_s28  ;;  %426 = vrot.lane.b32.xlu1 %v2315_v5, %s1815_s27 }
  0xad   : > { %424 = vrot.lane.b32.xlu0 %v2322_v43, %s1815_s27 }
  0xae   : > { %v2330_v34 = vpop.permute.xlu2 %291  ;;  %v2332_v37 = vpop.permute.xlu1 %271 }
  0xaf   : > { %3601 = vst [vmem:[#allocation64_spill] sm:$0xff] %v2332_v37  ;;  %v2334_v28 = vpop.permute.xlu0 %269 }
  0xb0   : > { %3602 = vst [vmem:[#allocation65_spill] sm:$0xff] %v2334_v28 }
  0xb4   : > { %464 = vrot.lane.b32.xlu2 %v1893_v0, %s1816_s28  ;;  %462 = vrot.lane.b32.xlu1 %v1909_v6, %s1816_s28 }
  0xb5   : > { %460 = vrot.lane.b32.xlu0 %v1896_v1, %s1816_s28 }
  0xb6   : > { %v2342_v49 = vpop.permute.xlu2 %297  ;;  %v2344_v5 = vpop.permute.xlu1 %277 }
  0xb7   : > { %3603 = vst [vmem:[#allocation66_spill] sm:$0xff] %v2344_v5  ;;  %v2346_v43 = vpop.permute.xlu0 %275 }
  0xb8   : > { %3604 = vst [vmem:[#allocation67_spill] sm:$0xff] %v2346_v43 }
  0xbc   : > { %470 = vrot.lane.b32.xlu2 %v1935_v15, %s1816_s28  ;;  %468 = vrot.lane.b32.xlu1 %v1941_v17, %s1816_s28 }
  0xbd   : > { %466 = vrot.lane.b32.xlu0 %v1944_v18, %s1816_s28 }
  0xbe   : > { %v2354_v37 = vpop.permute.xlu1 %283  ;;  %v2356_v28 = vpop.permute.xlu2 %374 }
  0xbf   : > { %3605 = vst [vmem:[#allocation68_spill] sm:$0xff] %v2354_v37  ;;  %v2358_v52 = vpop.permute.xlu0 %281 }
  0xc0   : > { %3606 = vst [vmem:[#allocation69_spill] sm:$0xff] %v2356_v28 }
  0xc1   : > { %3607 = vst [vmem:[#allocation70_spill] sm:$0xff] %v2358_v52 }
  0xc4   : > { %476 = vrot.lane.b32.xlu2 %v1968_v25, %s1816_s28  ;;  %474 = vrot.lane.b32.xlu1 %v1971_v26, %s1816_s28 }
  0xc5   : > { %472 = vrot.lane.b32.xlu0 %v1938_v16, %s1816_s28 }
  0xc6   : > { %v2366_v43 = vpop.permute.xlu1 %289  ;;  %v2368_v5 = vpop.permute.xlu2 %380 }
  0xc7   : > { %3608 = vst [vmem:[#allocation71_spill] sm:$0xff] %v2368_v5  ;;  %v2370_v8 = vpop.permute.xlu0 %287 }
  0xcc   : > { %482 = vrot.lane.b32.xlu2 %v1988_v30, %s1816_s28  ;;  %480 = vrot.lane.b32.xlu1 %v1994_v32, %s1816_s28 }
  0xcd   : > { %478 = vrot.lane.b32.xlu0 %v1997_v33, %s1816_s28 }
  0xce   : > { %v2378_v37 = vpop.permute.xlu1 %295  ;;  %v2380_v52 = vpop.permute.xlu2 %386 }
  0xcf   : > { %v2382_v28 = vpop.permute.xlu0 %293 }
  0xd4   : > { %488 = vrot.lane.b32.xlu2 %v2022_v40, %s1816_s28  ;;  %486 = vrot.lane.b32.xlu1 %v2025_v41, %s1816_s28 }
  0xd5   : > { %484 = vrot.lane.b32.xlu0 %v1991_v31, %s1816_s28 }
  0xd6   : > { %v2390_v5 = vpop.permute.xlu2 %392  ;;  %v2392_v1 = vpop.permute.xlu1 %372 }
  0xd7   : > { %3609 = vst [vmem:[#allocation72_spill] sm:$0xff] %v2390_v5  ;;  %v2394_v7 = vpop.permute.xlu0 %299 }
  0xd8   : > { %3610 = vst [vmem:[#allocation73_spill] sm:$0xff] %v2392_v1 }
  0xdc   : > { %494 = vrot.lane.b32.xlu2 %v2042_v45, %s1816_s28  ;;  %492 = vrot.lane.b32.xlu1 %v2048_v47, %s1816_s28 }
  0xdd   : > { %490 = vrot.lane.b32.xlu0 %v2051_v48, %s1816_s28 }
  0xde   : > { %v2402_v40 = vpop.permute.xlu2 %398  ;;  %v2404_v41 = vpop.permute.xlu1 %378 }
  0xdf   : > { %3611 = vst [vmem:[#allocation74_spill] sm:$0xff] %v2402_v40  ;;  %v2406_v5 = vpop.permute.xlu0 %376 }
  0xe0   : > { %3612 = vst [vmem:[#allocation75_spill] sm:$0xff] %v2404_v41 }
  0xe1   : > { %3613 = vst [vmem:[#allocation76_spill] sm:$0xff] %v2406_v5 }
  0xe4   : > { %500 = vrot.lane.b32.xlu2 %v2076_v55, %s1816_s28  ;;  %498 = vrot.lane.b32.xlu1 %v2079_v56, %s1816_s28 }
  0xe5   : > { %496 = vrot.lane.b32.xlu0 %v2045_v46, %s1816_s28 }
  0xe6   : > { %v2414_v47 = vpop.permute.xlu2 %404  ;;  %v2416_v45 = vpop.permute.xlu1 %384 }
  0xe7   : > { %3614 = vst [vmem:[#allocation77_spill] sm:$0xff] %v2414_v47  ;;  %v2418_v48 = vpop.permute.xlu0 %382  ;;  %v2433_v47 = vld [vmem:[%s1890_s25 + $0xe8] sm:$0xff] }
  0xe8   : > { %3615 = vst [vmem:[#allocation78_spill] sm:$0xff] %v2416_v45  ;;  %v2436_v45 = vld [vmem:[%s1890_s25 + $0xe0] sm:$0xff] }
  0xe9   : > { %3616 = vst [vmem:[#allocation79_spill] sm:$0xff] %v2418_v48 }
  0xea   : > { %3620 = vst [vmem:[#allocation83_spill] sm:$0xff] %v2433_v47 }
  0xeb   : > { %3621 = vst [vmem:[#allocation84_spill] sm:$0xff] %v2436_v45 }
  0xec   : > { %506 = vrot.lane.b32.xlu2 %v2096_v60, %s1816_s28  ;;  %504 = vrot.lane.b32.xlu1 %v2102_v62, %s1816_s28 }
  0xed   : > { %502 = vrot.lane.b32.xlu0 %v2105_v63, %s1816_s28 }
  0xee   : > { %v2426_v40 = vpop.permute.xlu2 %410  ;;  %v2428_v41 = vpop.permute.xlu1 %390 }
  0xef   : > { %3617 = vst [vmem:[#allocation80_spill] sm:$0xff] %v2426_v40  ;;  %v2430_v5 = vpop.permute.xlu0 %388 }
  0xf0   : > { %3618 = vst [vmem:[#allocation81_spill] sm:$0xff] %v2428_v41 }
  0xf1   : > { %3619 = vst [vmem:[#allocation82_spill] sm:$0xff] %v2430_v5 }
  0xf4   : > { %512 = vrot.lane.b32.xlu2 %v2433_v47, %s1816_s28  ;;  %510 = vrot.lane.b32.xlu1 %v2436_v45, %s1816_s28 }
  0xf5   : > { %508 = vrot.lane.b32.xlu0 %v2099_v61, %s1816_s28 }
  0xf6   : > { %v2444_v48 = vpop.permute.xlu2 %416  ;;  %v2446_v40 = vpop.permute.xlu1 %396 }
  0xf7   : > { %3622 = vst [vmem:[#allocation85_spill] sm:$0xff] %v2446_v40  ;;  %v2448_v41 = vpop.permute.xlu0 %394 }
  0xf8   : > { %3623 = vst [vmem:[#allocation86_spill] sm:$0xff] %v2448_v41 }
  0xfc   : > { %549 = vrot.lane.b32.xlu2 %v1927_v12, %s1817_s29  ;;  %547 = vrot.lane.b32.xlu1 %v1905_v4, %s1817_s29 }
  0xfd   : > { %545 = vrot.lane.b32.xlu0 %v1931_v13, %s1817_s29 }
  0xfe   : > { %v2456_v1 = vpop.permute.xlu2 %422  ;;  %v2458_v5 = vpop.permute.xlu1 %402 }
  0xff   : > { %3624 = vst [vmem:[#allocation87_spill] sm:$0xff] %v2458_v5  ;;  %v2460_v31 = vpop.permute.xlu0 %400 }
 0x100   : > { %3625 = vst [vmem:[#allocation88_spill] sm:$0xff] %v2460_v31 }
 0x104   : > { %555 = vrot.lane.b32.xlu2 %v1956_v21, %s1817_s29  ;;  %553 = vrot.lane.b32.xlu1 %v1965_v24, %s1817_s29 }
 0x105   : > { %551 = vrot.lane.b32.xlu0 %v1902_v3, %s1817_s29 }
 0x106   : > { %v2468_v41 = vpop.permute.xlu2 %458  ;;  %v2470_v4 = vpop.permute.xlu1 %408 }
 0x107   : > { %3626 = vst [vmem:[#allocation89_spill] sm:$0xff] %v2468_v41  ;;  %v2472_v13 = vpop.permute.xlu0 %406 }
 0x108   : > { %3627 = vst [vmem:[#allocation90_spill] sm:$0xff] %v2470_v4 }
 0x109   : > { %3628 = vst [vmem:[#allocation91_spill] sm:$0xff] %v2472_v13 }
 0x10c   : > { %561 = vrot.lane.b32.xlu2 %v1985_v29, %s1817_s29  ;;  %559 = vrot.lane.b32.xlu1 %v1953_v20, %s1817_s29 }
 0x10d   : > { %557 = vrot.lane.b32.xlu0 %v1961_v23, %s1817_s29 }
 0x10e   : > { %v2480_v5 = vpop.permute.xlu2 %464  ;;  %v2482_v31 = vpop.permute.xlu1 %414 }
 0x10f   : > { %3629 = vst [vmem:[#allocation92_spill] sm:$0xff] %v2480_v5  ;;  %v2484_v40 = vpop.permute.xlu0 %412 }
 0x110   : > { %3630 = vst [vmem:[#allocation93_spill] sm:$0xff] %v2484_v40 }
 0x114   : > { %567 = vrot.lane.b32.xlu2 %v2010_v36, %s1817_s29  ;;  %565 = vrot.lane.b32.xlu1 %v2019_v39, %s1817_s29 }
 0x115   : > { %563 = vrot.lane.b32.xlu0 %v1980_v27, %s1817_s29 }
 0x116   : > { %v2492_v13 = vpop.permute.xlu2 %470  ;;  %v2494_v4 = vpop.permute.xlu1 %420 }
 0x117   : > { %3631 = vst [vmem:[#allocation94_spill] sm:$0xff] %v2492_v13  ;;  %v2496_v41 = vpop.permute.xlu0 %418 }
 0x11c   : > { %573 = vrot.lane.b32.xlu2 %v2039_v44, %s1817_s29  ;;  %571 = vrot.lane.b32.xlu1 %v2007_v35, %s1817_s29 }
 0x11d   : > { %569 = vrot.lane.b32.xlu0 %v2015_v38, %s1817_s29 }
 0x11e   : > { %v2504_v40 = vpop.permute.xlu2 %476  ;;  %v2506_v5 = vpop.permute.xlu1 %426 }
 0x11f   : > { %3632 = vst [vmem:[#allocation95_spill] sm:$0xff] %v2504_v40  ;;  %v2508_v61 = vpop.permute.xlu0 %424 }
 0x124   : > { %579 = vrot.lane.b32.xlu2 %v2064_v51, %s1817_s29  ;;  %577 = vrot.lane.b32.xlu1 %v2073_v54, %s1817_s29 }
 0x125   : > { %575 = vrot.lane.b32.xlu0 %v2034_v42, %s1817_s29 }
 0x126   : > { %v2516_v13 = vpop.permute.xlu2 %482  ;;  %v2518_v35 = vpop.permute.xlu1 %462 }
 0x127   : > { %3633 = vst [vmem:[#allocation96_spill] sm:$0xff] %v2516_v13  ;;  %v2520_v44 = vpop.permute.xlu0 %460  ;;  %v542_v13 = vrot.slane %v2436_v45, 1 }
 0x128   : > { %3634 = vst [vmem:[#allocation97_spill] sm:$0xff] %v2520_v44 }
 0x12c   : > { %585 = vrot.lane.b32.xlu2 %v2093_v59, %s1817_s29  ;;  %583 = vrot.lane.b32.xlu1 %v2061_v50, %s1817_s29  ;;  %v2542_v50 = vrot.slane %v2433_v47, 1 }
 0x12d   : > { %581 = vrot.lane.b32.xlu0 %v2069_v53, %s1817_s29 }
 0x12e   : > { %v2528_v40 = vpop.permute.xlu2 %488  ;;  %v2530_v51 = vpop.permute.xlu1 %468  ;;  %3638 = vst [vmem:[#allocation101_spill] sm:$0xff] %v2542_v50 }
 0x12f   : > { %3635 = vst [vmem:[#allocation98_spill] sm:$0xff] %v2528_v40  ;;  %v2532_v42 = vpop.permute.xlu0 %466 }
 0x130   : > { %3636 = vst [vmem:[#allocation99_spill] sm:$0xff] %v2530_v51 }
 0x131   : > { %3637 = vst [vmem:[#allocation100_spill] sm:$0xff] %v2532_v42 }
 0x134   : > { %591 = vrot.lane.b32.xlu2 %v2118_v10, %s1817_s29  ;;  %589 = vrot.lane.b32.xlu1 %v2127_v19, %s1817_s29  ;;  %v2552_v10 = vsel %vm202_vm0, %v542_v13, %v2542_v50  ;;  %v3649_v19 = vld [vmem:[#allocation32_spill] sm:$0xff] }
 0x135   : > { %587 = vrot.lane.b32.xlu0 %v2088_v57, %s1817_s29  ;;  %3640 = vst [vmem:[#allocation103_spill] sm:$0xff] %v2552_v10 }
 0x136   : > { %v2544_v59 = vpop.permute.xlu2 %494  ;;  %v2546_v40 = vpop.permute.xlu1 %474 }
 0x137   : > { %3639 = vst [vmem:[#allocation102_spill] sm:$0xff] %v2544_v59  ;;  %v2548_v51 = vpop.permute.xlu0 %472 }
 0x13c   : > { %597 = vrot.lane.b32.xlu2 %v2552_v10, %s1817_s29  ;;  %595 = vrot.lane.b32.xlu1 %v2115_v9, %s1817_s29  ;;  %v3645_v9 = vld [vmem:[#allocation27_spill] sm:$0xff] }
 0x13d   : > { %593 = vrot.lane.b32.xlu0 %v2123_v14, %s1817_s29 }
 0x13e   : > { %v2560_v45 = vpop.permute.xlu2 %500  ;;  %v2562_v59 = vpop.permute.xlu1 %480 }
 0x13f   : > { %3641 = vst [vmem:[#allocation104_spill] sm:$0xff] %v2562_v59  ;;  %v2564_v47 = vpop.permute.xlu0 %478 }
 0x140   : > { %3642 = vst [vmem:[#allocation105_spill] sm:$0xff] %v2564_v47 }
 0x144   : > { %634 = vrot.lane.b32.xlu2 %v2147_v2, %s1818_s30  ;;  %632 = vrot.lane.b32.xlu1 %v2156_v58, %s1818_s30  ;;  %v3646_v2 = vld [vmem:[#allocation28_spill] sm:$0xff] }
 0x145   : > { %599 = vrot.lane.b32.xlu0 %v2542_v50, %s1817_s29 }
 0x146   : > { %v2572_v13 = vpop.permute.xlu2 %506  ;;  %v2574_v10 = vpop.permute.xlu1 %486 }
 0x147   : > { %3643 = vst [vmem:[#allocation106_spill] sm:$0xff] %v2574_v10  ;;  %v2576_v14 = vpop.permute.xlu0 %484  ;;  %v3650_v10 = vld [vmem:[#allocation34_spill] sm:$0xff] }
 0x148   : > { %3644 = vst [vmem:[#allocation107_spill] sm:$0xff] %v2576_v14  ;;  %v3651_v14 = vld [vmem:[#allocation29_spill] sm:$0xff] }
 0x14c   : > { %640 = vrot.lane.b32.xlu2 %v2170_v22, %s1818_s30  ;;  %638 = vrot.lane.b32.xlu1 %v3645_v9, %s1818_s30 }
 0x14d   : > { %636 = vrot.lane.b32.xlu0 %v3646_v2, %s1818_s30 }
 0x14e   : > { %v2584_v59 = vpop.permute.xlu2 %512  ;;  %v2586_v58 = vpop.permute.xlu1 %492 }
 0x14f   : > { %3647 = vst [vmem:[#allocation27_spill] sm:$0xff] %v2586_v58  ;;  %v2588_v50 = vpop.permute.xlu0 %490  ;;  %v3654_v58 = vld [vmem:[#allocation33_spill] sm:$0xff] }
 0x150   : > { %3648 = vst [vmem:[#allocation28_spill] sm:$0xff] %v2588_v50 }
 0x154   : > { %646 = vrot.lane.b32.xlu2 %v3649_v19, %s1818_s30  ;;  %644 = vrot.lane.b32.xlu1 %v3650_v10, %s1818_s30 }
 0x155   : > { %642 = vrot.lane.b32.xlu0 %v3651_v14, %s1818_s30 }
 0x156   : > { %v2596_v47 = vpop.permute.xlu2 %549  ;;  %v2598_v57 = vpop.permute.xlu1 %498 }
 0x157   : > { %3652 = vst [vmem:[#allocation32_spill] sm:$0xff] %v2598_v57  ;;  %v2600_v42 = vpop.permute.xlu0 %496 }
 0x158   : > { %3653 = vst [vmem:[#allocation34_spill] sm:$0xff] %v2600_v42 }
 0x15c   : > { %805 = vrot.lane.b32.xlu2 %v1927_v12, %s1819_s3  ;;  %718 = vrot.lane.b32.xlu1 %v1909_v6, %s1820_s4 }
 0x15d   : > { %648 = vrot.lane.b32.xlu0 %v3654_v58, %s1818_s30 }
 0x15e   : > { %v2608_v50 = vpop.permute.xlu2 %555  ;;  %v505_v53 = vpop.permute.xlu1 %504 }
 0x15f   : > { %v2610_v44 = vpop.permute.xlu0 %502 }
 0x164   : > { %809 = vrot.lane.b32.xlu2 %v1965_v24, %s1819_s3  ;;  %722 = vrot.lane.b32.xlu1 %v1944_v18, %s1820_s4 }
 0x165   : > { %892 = vrot.lane.b32.xlu0 %v3646_v2, %s1821_s5 }
 0x166   : > { %v2618_v12 = vpop.permute.xlu2 %561  ;;  %v511_v6 = vpop.permute.xlu1 %510 }
 0x167   : > { %v2620_v57 = vpop.permute.xlu0 %508 }
 0x16c   : > { %811 = vrot.lane.b32.xlu2 %v1956_v21, %s1819_s3  ;;  %896 = vrot.lane.b32.xlu1 %v2170_v22, %s1821_s5 }
 0x16d   : > { %724 = vrot.lane.b32.xlu0 %v1941_v17, %s1820_s4 }
 0x16e   : > { %v2628_v24 = vpop.permute.xlu2 %567  ;;  %v2630_v18 = vpop.permute.xlu1 %547 }
 0x16f   : > { %v2632_v42 = vpop.permute.xlu0 %545 }
 0x174   : > { %807 = vrot.lane.b32.xlu2 %v1902_v3, %s1819_s3  ;;  %898 = vrot.lane.b32.xlu1 %v3651_v14, %s1821_s5 }
 0x175   : > { %720 = vrot.lane.b32.xlu0 %v1893_v0, %s1820_s4 }
 0x176   : > { %v2640_v21 = vpop.permute.xlu2 %573  ;;  %v2642_v22 = vpop.permute.xlu1 %553 }
 0x177   : > { %3655 = vst [vmem:[#allocation29_spill] sm:$0xff] %v2640_v21  ;;  %v2644_v2 = vpop.permute.xlu0 %551 }
 0x17c   : > { %728 = vrot.lane.b32.xlu2 %v1938_v16, %s1820_s4  ;;  %726 = vrot.lane.b32.xlu1 %v1935_v15, %s1820_s4 }
 0x17d   : > { %894 = vrot.lane.b32.xlu0 %v3645_v9, %s1821_s5 }
 0x17e   : > { %v2652_v3 = vpop.permute.xlu2 %579  ;;  %v2654_v14 = vpop.permute.xlu1 %559 }
 0x17f   : > { %3656 = vst [vmem:[#allocation33_spill] sm:$0xff] %v2652_v3  ;;  %v2656_v0 = vpop.permute.xlu0 %557  ;;  %v1000_v3 = vsel %vm976_vm2, %v2076_v55, %v2330_v34 }
 0x184   : > { %900 = vrot.lane.b32.xlu2 %v3650_v10, %s1821_s5  ;;  %815 = vrot.lane.b32.xlu1 %v1953_v20, %s1819_s3  ;;  %v1029_v20 = vsel %vm1005_vm3, %v1000_v3, %v2496_v41 }
 0x185   : > { %813 = vrot.lane.b32.xlu0 %v1961_v23, %s1819_s3  ;;  %v1058_v23 = vsel %vm1034_vm4, %v1029_v20, %v505_v53  ;;  %v3659_v20 = vld [vmem:[#allocation37_spill] sm:$0xff] }
 0x186   : > { %v2664_v16 = vpop.permute.xlu2 %585  ;;  %v2666_v21 = vpop.permute.xlu1 %565 }
 0x187   : > { %3657 = vst [vmem:[#allocation108_spill] sm:$0xff] %v2664_v16  ;;  %v2668_v9 = vpop.permute.xlu0 %563 }
 0x18c   : > { %732 = vrot.lane.b32.xlu2 %v1968_v25, %s1820_s4  ;;  %730 = vrot.lane.b32.xlu1 %v1971_v26, %s1820_s4  ;;  %v1003_v26 = vsel %vm976_vm2, %v2096_v60, %v2342_v49 }
 0x18d   : > { %902 = vrot.lane.b32.xlu0 %v3649_v19, %s1821_s5  ;;  %v1032_v41 = vsel %vm1005_vm3, %v1003_v26, %v2508_v61 }
 0x18e   : > { %v592_v10 = vpop.permute.xlu2 %591  ;;  %v2682_v16 = vpop.permute.xlu1 %571  ;;  %v1061_v53 = vsel %vm1034_vm4, %v1032_v41, %v511_v6 }
 0x18f   : > { %v2685_v55 = vsel %vm1063_vm5, %v1058_v23, %v592_v10  ;;  %v2687_v25 = vpop.permute.xlu0 %569 }
 0x194   : > { %904 = vrot.lane.b32.xlu2 %v3654_v58, %s1821_s5  ;;  %819 = vrot.lane.b32.xlu1 %v1980_v27, %s1819_s3  ;;  %v3658_v27 = vld [vmem:[#allocation30_spill] sm:$0xff]  ;;  %v999_v58 = vsel %vm976_vm2, %v2079_v56, %v2366_v43 }
 0x195   : > { %817 = vrot.lane.b32.xlu0 %v1985_v29, %s1819_s3  ;;  %v1028_v6 = vsel %vm1005_vm3, %v999_v58, %v2444_v48 }
 0x196   : > { %v598_v19 = vpop.permute.xlu2 %597  ;;  %v2701_v34 = vpop.permute.xlu1 %577  ;;  %v1057_v43 = vsel %vm1034_vm4, %v1028_v6, %v2610_v44  ;;  %v1002_v44 = vsel %vm976_vm2, %v2102_v62, %v2378_v37  ;;  %v3660_v62 = vld [vmem:[#allocation35_spill] sm:$0xff] }
 0x197   : > { %v2704_v3 = vsel %vm1063_vm5, %v1061_v53, %v598_v19  ;;  %v2706_v60 = vpop.permute.xlu0 %575 }
 0x19c   : > { %736 = vrot.lane.b32.xlu2 %v1994_v32, %s1820_s4  ;;  %650 = vrot.lane.b32.xlu1 %v3658_v27, %s1818_s30  ;;  %v998_v32 = vsel %vm976_vm2, %v2045_v46, %v2370_v8 }
 0x19d   : > { %906 = vrot.lane.b32.xlu0 %v3658_v27, %s1821_s5  ;;  %v1027_v23 = vsel %vm1005_vm3, %v998_v32, %v2482_v31  ;;  %v984_v31 = vsel %vm976_vm2, %v1941_v17, %v2296_v11  ;;  %v1031_v17 = vsel %vm1005_vm3, %v1002_v44, %v2456_v1 }
 0x19e   : > { %v2714_v29 = vpop.permute.xlu2 %634  ;;  %v2716_v61 = vpop.permute.xlu1 %583  ;;  %v1013_v26 = vsel %vm1005_vm3, %v984_v31, %v2380_v52  ;;  %v3667_v31 = vld [vmem:[#allocation39_spill] sm:$0xff] }
 0x19f   : > { %v2718_v49 = vpop.permute.xlu0 %581  ;;  %v1042_v11 = vsel %vm1034_vm4, %v1013_v26, %v2548_v51  ;;  %v985_v44 = vsel %vm976_vm2, %v1935_v15, %v3667_v31  ;;  %v3668_v26 = vld [vmem:[#allocation40_spill] sm:$0xff]  ;;  %v3672_v15 = vld [vmem:[#allocation7_spill] sm:$0xff] }
 0x1a0   : > { %v3679_v31 = vld [vmem:[#allocation76_spill] sm:$0xff] }
 0x1a4   : > { %738 = vrot.lane.b32.xlu2 %v1988_v30, %s1820_s4  ;;  %823 = vrot.lane.b32.xlu1 %v2010_v36, %s1819_s3  ;;  %v1056_v36 = vsel %vm1034_vm4, %v1027_v23, %v2560_v45  ;;  %v1001_v45 = vsel %vm976_vm2, %v2105_v63, %v2382_v28  ;;  %v3664_v23 = vld [vmem:[#allocation13_spill] sm:$0xff] }
 0x1a5   : > { %652 = vrot.lane.b32.xlu0 %v3659_v20, %s1818_s30  ;;  %v1030_v37 = vsel %vm1005_vm3, %v1001_v45, %v2494_v4  ;;  %v3669_v45 = vld [vmem:[#allocation41_spill] sm:$0xff] }
 0x1a6   : > { %v2738_v30 = vpop.permute.xlu2 %640  ;;  %v590_v10 = vpop.permute.xlu1 %589  ;;  %v1059_v1 = vsel %vm1034_vm4, %v1030_v37, %v2572_v13 }
 0x1a7   : > { %v2743_v46 = vsel %vm1063_vm5, %v1057_v43, %v590_v10  ;;  %v588_v8 = vpop.permute.xlu0 %587  ;;  %v3666_v43 = vld [vmem:[#allocation11_spill] sm:$0xff] }
 0x1a8   : > { %v2746_v48 = vsel %vm1063_vm5, %v1056_v36, %v588_v8 }
 0x1ac   : > { %734 = vrot.lane.b32.xlu2 %v1997_v33, %s1820_s4  ;;  %825 = vrot.lane.b32.xlu1 %v2015_v38, %s1819_s3  ;;  %v1060_v33 = vsel %vm1034_vm4, %v1031_v17, %v2620_v57  ;;  %v1071_v38 = vsel %vm1063_vm5, %v1042_v11, %v2654_v14  ;;  %v3661_v57 = vld [vmem:[#allocation22_spill] sm:$0xff] }
 0x1ad   : > { %910 = vrot.lane.b32.xlu0 %v3660_v62, %s1821_s5  ;;  %v1004_v13 = vsel %vm976_vm2, %v3661_v57, %v2394_v7  ;;  %v3662_v14 = vld [vmem:[#allocation42_spill] sm:$0xff] }
 0x1ae   : > { %v647_v63 = vpop.permute.xlu2 %646  ;;  %v596_v28 = vpop.permute.xlu1 %595  ;;  %v1033_v53 = vsel %vm1005_vm3, %v1004_v13, %v2506_v5  ;;  %v3670_v17 = vld [vmem:[#allocation82_spill] sm:$0xff] }
 0x1af   : > { %v2778_v51 = vsel %vm1092_vm6, %v1071_v38, %v647_v63  ;;  %v2781_v52 = vsel %vm1063_vm5, %v1060_v33, %v596_v28  ;;  %v594_v41 = vpop.permute.xlu0 %593  ;;  %v1062_v58 = vsel %vm1034_vm4, %v1033_v53, %v2584_v59  ;;  %v3665_v59 = vld [vmem:[#allocation9_spill] sm:$0xff]  ;;  %v1014_v11 = vsel %vm1005_vm3, %v985_v44, %v3670_v17  ;;  %v3671_v38 = vld [vmem:[#allocation52_spill] sm:$0xff] }
 0x1b0   : > { %v2784_v4 = vsel %vm1063_vm5, %v1059_v1, %v594_v41  ;;  %v977_v63 = vsel %vm976_vm2, %v3672_v15, %v3671_v38  ;;  %v3673_v41 = vld [vmem:[#allocation73_spill] sm:$0xff] }
 0x1b1   : > { %v1006_v57 = vsel %vm1005_vm3, %v977_v63, %v3673_v41  ;;  %v3683_v41 = vld [vmem:[#allocation5_spill] sm:$0xff] }
 0x1b4   : > { %908 = vrot.lane.b32.xlu2 %v3659_v20, %s1821_s5  ;;  %821 = vrot.lane.b32.xlu1 %v2019_v39, %s1819_s3  ;;  %v3663_v39 = vld [vmem:[#allocation8_spill] sm:$0xff] }
 0x1b5   : > { %912 = vrot.lane.b32.xlu0 %v3662_v14, %s1821_s5 }
 0x1b6   : > { %v806_v19 = vpop.permute.xlu2 %805  ;;  %v633_v27 = vpop.permute.xlu1 %632 }
 0x1b7   : > { %v600_v32 = vpop.permute.xlu0 %599 }
 0x1b8   : > { %v2800_v6 = vsel %vm1063_vm5, %v1062_v58, %v600_v32 }
 0x1bc   : > { %740 = vrot.lane.b32.xlu2 %v3663_v39, %s1820_s4  ;;  %656 = vrot.lane.b32.xlu1 %v3662_v14, %s1818_s30  ;;  %v3674_v14 = vld [vmem:[#allocation89_spill] sm:$0xff]  ;;  %v3676_v39 = vld [vmem:[#allocation10_spill] sm:$0xff] }
 0x1bd   : > { %654 = vrot.lane.b32.xlu0 %v3660_v62, %s1818_s30  ;;  %v1043_v62 = vsel %vm1034_vm4, %v1014_v11, %v2546_v40  ;;  %v1035_v40 = vsel %vm1034_vm4, %v1006_v57, %v3674_v14 }
 0x1be   : > { %v810_v7 = vpop.permute.xlu2 %809  ;;  %v2808_v5 = vpop.permute.xlu1 %638  ;;  %v1072_v28 = vsel %vm1063_vm5, %v1043_v62, %v2618_v12  ;;  %v1064_v53 = vsel %vm1063_vm5, %v1035_v40, %v2632_v42  ;;  %v3675_v12 = vld [vmem:[#allocation16_spill] sm:$0xff] }
 0x1bf   : > { %v637_v20 = vpop.permute.xlu0 %636  ;;  %v1093_v58 = vsel %vm1092_vm6, %v1064_v53, %v633_v27  ;;  %v3684_v53 = vld [vmem:[#allocation75_spill] sm:$0xff] }
 0x1c4   : > { %829 = vrot.lane.b32.xlu2 %v3664_v23, %s1819_s3  ;;  %827 = vrot.lane.b32.xlu1 %v3665_v59, %s1819_s3  ;;  %v3677_v23 = vld [vmem:[#allocation50_spill] sm:$0xff] }
 0x1c5   : > { %742 = vrot.lane.b32.xlu0 %v3666_v43, %s1820_s4  ;;  %v3678_v59 = vld [vmem:[#allocation6_spill] sm:$0xff] }
 0x1c6   : > { %v2816_v10 = vpop.permute.xlu2 %811  ;;  %v2818_v36 = vpop.permute.xlu1 %644  ;;  %v979_v43 = vsel %vm976_vm2, %v3678_v59, %v3677_v23 }
 0x1c7   : > { %v2820_v8 = vpop.permute.xlu0 %642  ;;  %v1008_v44 = vsel %vm1005_vm3, %v979_v43, %v3679_v31 }
 0x1c8   : > { %v1037_v11 = vsel %vm1034_vm4, %v1008_v44, %v2518_v35  ;;  %v3681_v35 = vld [vmem:[#allocation12_spill] sm:$0xff] }
 0x1c9   : > { %v1066_v62 = vsel %vm1063_vm5, %v1037_v11, %v2596_v47  ;;  %v3682_v47 = vld [vmem:[#allocation45_spill] sm:$0xff] }
 0x1ca   : > { %v1095_v38 = vsel %vm1092_vm6, %v1066_v62, %v637_v20  ;;  %v980_v20 = vsel %vm976_vm2, %v3683_v41, %v3682_v47  ;;  %v1727_v62 = vld [vmem:[%s1890_s25 + $0x8] sm:$0xff] }
 0x1cb   : > { %v3690_v47 = vld [vmem:[#allocation97_spill] sm:$0xff] }
 0x1cc   : > { %658 = vrot.lane.b32.xlu2 %v3668_v26, %s1818_s30  ;;  %916 = vrot.lane.b32.xlu1 %v3669_v45, %s1821_s5 }
 0x1cd   : > { %914 = vrot.lane.b32.xlu0 %v3668_v26, %s1821_s5 }
 0x1ce   : > { %v2835_v37 = vpop.permute.xlu2 %807  ;;  %v719_v33 = vpop.permute.xlu1 %718 }
 0x1cf   : > { %v649_v1 = vpop.permute.xlu0 %648  ;;  %v1122_v32 = vsel %vm1121_vm7, %v1093_v58, %v719_v33  ;;  %v1009_v58 = vsel %vm1005_vm3, %v980_v20, %v3684_v53  ;;  %v3692_v53 = vld [vmem:[#allocation19_spill] sm:$0xff] }
 0x1d0   : > { %v2845_v13 = vsel %vm1092_vm6, %v1072_v28, %v649_v1  ;;  %v1151_v26 = vsel %vm1150_vm8, %v1122_v32, %v806_v19  ;;  %v3680_v19 = vld [vmem:[#allocation38_spill] sm:$0xff] }
 0x1d4   : > { %746 = vrot.lane.b32.xlu2 %v3675_v12, %s1820_s4  ;;  %744 = vrot.lane.b32.xlu1 %v3676_v39, %s1820_s4  ;;  %v3685_v12 = vld [vmem:[#allocation92_spill] sm:$0xff] }
 0x1d5   : > { %660 = vrot.lane.b32.xlu0 %v3669_v45, %s1818_s30  ;;  %v1038_v39 = vsel %vm1034_vm4, %v1009_v58, %v3685_v12 }
 0x1d6   : > { %v2862_v42 = vpop.permute.xlu2 %728  ;;  %v723_v27 = vpop.permute.xlu1 %722  ;;  %v1067_v59 = vsel %vm1063_vm5, %v1038_v39, %v2644_v2  ;;  %v1728_v39 = vld [vmem:[%s1890_s25 + $0x20] sm:$0xff] }
 0x1d7   : > { %v893_v17 = vpop.permute.xlu0 %892  ;;  %v1124_v1 = vsel %vm1121_vm7, %v1095_v38, %v723_v27  ;;  %v1096_v43 = vsel %vm1092_vm6, %v1067_v59, %v2808_v5 }
 0x1d8   : > { %v1180_v45 = vsel %vm1179_vm9, %v1151_v26, %v893_v17  ;;  %v1153_v40 = vsel %vm1150_vm8, %v1124_v1, %v810_v7  ;;  %v3686_v26 = vld [vmem:[#allocation14_spill] sm:$0xff]  ;;  %v3687_v17 = vld [vmem:[#allocation47_spill] sm:$0xff] }
 0x1d9   : > { %v1209_v33 = vsel %vm1208_vm10, %v1180_v45, 1.0 }
 0x1da   : > { %v1265_v15 = vrot.slane %v1209_v33, 2  ;;  %v1266_v63 = vrot.slane %v1209_v33, 4  ;;  %v1267_v28 = vrot.slane %v1209_v33, 6  ;;  %1336 = vst [vmem:[#allocation1] ss:$4 sm:$0xff] %v1209_v33  ;;  %v3688_v33 = vld [vmem:[#allocation46_spill] sm:$0xff] }
 0x1db   : > { %v978_v38 = vsel %vm976_vm2, %v1727_v62, %v3688_v33 }
 0x1dc   : > { %1338 = vst [vmem:[#allocation1 + $0x1] ss:$4 sm:$0xff] %v1265_v15  ;;  %918 = vrot.lane.b32.xlu2 %v3680_v19, %s1821_s5  ;;  %833 = vrot.lane.b32.xlu1 %v2073_v54, %s1819_s3 }
 0x1dd   : > { %1340 = vst [vmem:[#allocation1 + $0x2] ss:$4 sm:$0xff] %v1266_v63  ;;  %831 = vrot.lane.b32.xlu0 %v3681_v35, %s1819_s3 }
 0x1de   : > { %1342 = vst [vmem:[#allocation1 + $0x3] ss:$4 sm:$0xff] %v1267_v28  ;;  %v2884_v57 = vpop.permute.xlu2 %900  ;;  %v897_v14 = vpop.permute.xlu1 %896  ;;  %v3689_v28 = vld [vmem:[#allocation69_spill] sm:$0xff] }
 0x1df   : > { %v1182_v32 = vsel %vm1179_vm9, %v1153_v40, %v897_v14  ;;  %v725_v54 = vpop.permute.xlu0 %724  ;;  %v1007_v1 = vsel %vm1005_vm3, %v978_v38, %v3689_v28  ;;  %v3691_v40 = vld [vmem:[#allocation54_spill] sm:$0xff]  ;;  %v1729_v28 = vld [vmem:[%s1890_s25 + $0x28] sm:$0xff] }
 0x1e0   : > { %v1211_v23 = vsel %vm1208_vm10, %v1182_v32, 1.0  ;;  %v1125_v31 = vsel %vm1121_vm7, %v1096_v43, %v725_v54  ;;  %v1036_v41 = vsel %vm1034_vm4, %v1007_v1, %v3690_v47  ;;  %v3699_v1 = vld [vmem:[#allocation31_spill] sm:$0xff] }
 0x1e1   : > { %1350 = vst [vmem:[#allocation1 + $0x23] ss:$4 sm:$0xff] %v1211_v23  ;;  %v1270_v7 = vrot.slane %v1211_v23, 2  ;;  %v1271_v27 = vrot.slane %v1211_v23, 4  ;;  %v1272_v44 = vrot.slane %v1211_v23, 6  ;;  %v1154_v45 = vsel %vm1150_vm8, %v1125_v31, %v2816_v10  ;;  %v3693_v23 = vld [vmem:[#allocation36_spill] sm:$0xff] }
 0x1e2   : > { %v1065_v10 = vsel %vm1063_vm5, %v1036_v41, %v2630_v18  ;;  %v3695_v31 = vld [vmem:[#allocation100_spill] sm:$0xff]  ;;  %v982_v47 = vsel %vm976_vm2, %v1729_v28, %v3699_v1  ;;  %v3700_v41 = vld [vmem:[#allocation79_spill] sm:$0xff] }
 0x1e3   : > { %v1094_v20 = vsel %vm1092_vm6, %v1065_v10, %v2714_v29  ;;  %v1011_v10 = vsel %vm1005_vm3, %v982_v47, %v3700_v41 }
 0x1e4   : > { %750 = vrot.lane.b32.xlu2 %v3686_v26, %s1820_s4  ;;  %664 = vrot.lane.b32.xlu1 %v3687_v17, %s1818_s30  ;;  %v3697_v26 = vld [vmem:[#allocation18_spill] sm:$0xff] }
 0x1e5   : > { %v2902_v11 = vld.sshfl [vmem:[#allocation1] sm:$0xff pattern:$0x73625140]  ;;  %920 = vrot.lane.b32.xlu0 %v3687_v17, %s1821_s5 }
 0x1e6   : > { %1353 = vst [vmem:[#allocation1] ss:$4 sm:$0xff] %v1270_v7  ;;  %v2906_v2 = vpop.permute.xlu2 %732  ;;  %v899_v5 = vpop.permute.xlu1 %898  ;;  %v3694_v7 = vld [vmem:[#allocation71_spill] sm:$0xff] }
 0x1e7   : > { %1354 = vst [vmem:[#allocation1 + $0x1] ss:$4 sm:$0xff] %v1271_v27  ;;  %v1183_v15 = vsel %vm1179_vm9, %v1154_v45, %v899_v5  ;;  %v721_v63 = vpop.permute.xlu0 %720  ;;  %v3698_v5 = vld [vmem:[#allocation15_spill] sm:$0xff] }
 0x1e8   : > { %1355 = vst [vmem:[#allocation1 + $0x2] ss:$4 sm:$0xff] %v1272_v44  ;;  %v1212_v35 = vsel %vm1208_vm10, %v1183_v15, 1.0  ;;  %v1123_v14 = vsel %vm1121_vm7, %v1094_v20, %v721_v63  ;;  %v3701_v20 = vld [vmem:[#allocation99_spill] sm:$0xff] }
 0x1e9   : > { %1356 = vst [vmem:[#allocation1 + $0x3] ss:$4 sm:$0xff] %v1212_v35  ;;  %v1152_v18 = vsel %vm1150_vm8, %v1123_v14, %v2835_v37  ;;  %v3696_v37 = vld [vmem:[#allocation43_spill] sm:$0xff]  ;;  %v1040_v14 = vsel %vm1034_vm4, %v1011_v10, %v3701_v20 }
 0x1ec   : > { %662 = vrot.lane.b32.xlu2 %v3680_v19, %s1818_s30  ;;  %924 = vrot.lane.b32.xlu1 %v3691_v40, %s1821_s5  ;;  %v981_v19 = vsel %vm976_vm2, %v1728_v39, %v3693_v23 }
 0x1ed   : > { %837 = vrot.lane.b32.xlu0 %v3692_v53, %s1819_s3  ;;  %v1010_v27 = vsel %vm1005_vm3, %v981_v19, %v3694_v7  ;;  %v1273_v53 = vrot.slane %v1212_v35, 2  ;;  %v1730_v7 = vld [vmem:[%s1890_s25 + $0x30] sm:$0xff] }
 0x1ee   : > { %v2930_v58 = vpop.permute.xlu2 %904  ;;  %v727_v32 = vpop.permute.xlu1 %726  ;;  %v1039_v44 = vsel %vm1034_vm4, %v1010_v27, %v3695_v31 }
 0x1ef   : > { %v895_v54 = vpop.permute.xlu0 %894  ;;  %v1068_v17 = vsel %vm1063_vm5, %v1039_v44, %v2642_v22  ;;  %v3704_v44 = vld [vmem:[#allocation78_spill] sm:$0xff] }
 0x1f0   : > { %v1181_v29 = vsel %vm1179_vm9, %v1152_v18, %v895_v54  ;;  %v1097_v45 = vsel %vm1092_vm6, %v1068_v17, %v2738_v30  ;;  %v1274_v18 = vrot.slane %v1212_v35, 4  ;;  %v3705_v17 = vld [vmem:[#allocation94_spill] sm:$0xff] }
 0x1f1   : > { %v1210_v12 = vsel %vm1208_vm10, %v1181_v29, 1.0  ;;  %v1126_v38 = vsel %vm1121_vm7, %v1097_v45, %v727_v32  ;;  %v1069_v32 = vsel %vm1063_vm5, %v1040_v14, %v2608_v50 }
 0x1f2   : > { %v1268_v59 = vrot.slane %v1210_v12, 2  ;;  %v1269_v43 = vrot.slane %v1210_v12, 4  ;;  %1344 = vst [vmem:[#allocation1 + $0x20] ss:$4 sm:$0xff] %v1210_v12  ;;  %v3702_v12 = vld [vmem:[#allocation51_spill] sm:$0xff] }
 0x1f4   : > { %1346 = vst [vmem:[#allocation1 + $0x21] ss:$4 sm:$0xff] %v1268_v59  ;;  %922 = vrot.lane.b32.xlu2 %v3696_v37, %s1821_s5  ;;  %835 = vrot.lane.b32.xlu1 %v3697_v26, %s1819_s3 }
 0x1f5   : > { %1348 = vst [vmem:[#allocation1 + $0x22] ss:$4 sm:$0xff] %v1269_v43  ;;  %748 = vrot.lane.b32.xlu0 %v3698_v5, %s1820_s4 }
 0x1f6   : > { %v2953_v62 = vpop.permute.xlu2 %736  ;;  %v816_v33 = vpop.permute.xlu1 %815 }
 0x1f7   : > { %v814_v15 = vpop.permute.xlu0 %813 }
 0x1f8   : > { %v1155_v63 = vsel %vm1150_vm8, %v1126_v38, %v814_v15  ;;  %v1731_v38 = vld [vmem:[%s1890_s25 + $0xb8] sm:$0xff] }
 0x1f9   : > { %v1184_v22 = vsel %vm1179_vm9, %v1155_v63, %v2884_v57  ;;  %v1098_v57 = vsel %vm1092_vm6, %v1069_v32, %v2820_v8  ;;  %v2984_v8 = vld.sshfl [vmem:[#allocation1] sm:$0xff pattern:$0x73625140]  ;;  %v3707_v63 = vld [vmem:[#allocation21_spill] sm:$0xff] }
 0x1fa   : > { %v1213_v30 = vsel %vm1208_vm10, %v1184_v22, 1.0  ;;  %v1127_v50 = vsel %vm1121_vm7, %v1098_v57, %v2862_v42  ;;  %v3703_v42 = vld [vmem:[#allocation57_spill] sm:$0xff] }
 0x1fb   : > { %v1275_v29 = vrot.slane %v1213_v30, 2  ;;  %v1276_v39 = vrot.slane %v1213_v30, 4  ;;  %v1277_v35 = vrot.slane %v1213_v30, 6  ;;  %v1156_v59 = vsel %vm1150_vm8, %v1127_v50, %v816_v33  ;;  %v3706_v33 = vld [vmem:[#allocation53_spill] sm:$0xff] }
 0x1fc   : > { %v2969_v54 = vld.sshfl [vmem:[#allocation1 + $0x20] sm:$0xff pattern:$0x73625140]  ;;  %670 = vrot.lane.b32.xlu2 %v3702_v12, %s1818_s30  ;;  %754 = vrot.lane.b32.xlu1 %v2079_v56, %s1820_s4  ;;  %v983_v27 = vsel %vm976_vm2, %v1730_v7, %v3703_v42  ;;  %v1733_v7 = vld [vmem:[%s1890_s25 + $0x48] sm:$0xff]  ;;  %v3711_v42 = vld [vmem:[#allocation62_spill] sm:$0xff] }
 0x1fd   : > { %1357 = vst [vmem:[#allocation1 + $0x20] ss:$4 sm:$0xff] %v1273_v53  ;;  %668 = vrot.lane.b32.xlu0 %v3691_v40, %s1818_s30  ;;  %v1012_v26 = vsel %vm1005_vm3, %v983_v27, %v3704_v44  ;;  %v986_v27 = vsel %vm976_vm2, %v1733_v7, %v3711_v42  ;;  %v3712_v44 = vld [vmem:[#allocation81_spill] sm:$0xff] }
 0x1fe   : > { %1358 = vst [vmem:[#allocation1 + $0x21] ss:$4 sm:$0xff] %v1274_v18  ;;  %v2981_v23 = vpop.permute.xlu2 %738  ;;  %v731_v19 = vpop.permute.xlu1 %730  ;;  %v1041_v5 = vsel %vm1034_vm4, %v1012_v26, %v3705_v17  ;;  %v3708_v18 = vld [vmem:[#allocation20_spill] sm:$0xff]  ;;  %v1015_v26 = vsel %vm1005_vm3, %v986_v27, %v3712_v44 }
 0x1ff   : > { %1359 = vst [vmem:[#allocation1 + $0x22] ss:$4 sm:$0xff] %v1213_v30  ;;  %v903_v56 = vpop.permute.xlu0 %902  ;;  %v1070_v15 = vsel %vm1063_vm5, %v1041_v5, %v2656_v0 }
 0x200   : > { %1360 = vst [vmem:[#allocation1 + $0x23] ss:$4 sm:$0xff] %v1275_v29  ;;  %v1185_v43 = vsel %vm1179_vm9, %v1156_v59, %v903_v56  ;;  %v1099_v28 = vsel %vm1092_vm6, %v1070_v15, %v2818_v36  ;;  %v1732_v36 = vld [vmem:[%s1890_s25 + $0xa8] sm:$0xff] }
 0x201   : > { %1363 = vst [vmem:[#allocation1] ss:$4 sm:$0xff] %v1276_v39  ;;  %v1214_v40 = vsel %vm1208_vm10, %v1185_v43, 1.0  ;;  %v1128_v41 = vsel %vm1121_vm7, %v1099_v28, %v731_v19 }
 0x202   : > { %1364 = vst [vmem:[#allocation1 + $0x1] ss:$4 sm:$0xff] %v1277_v35  ;;  %v1278_v31 = vrot.slane %v1214_v40, 2  ;;  %v1279_v45 = vrot.slane %v1214_v40, 4 }
 0x203   : > { %1365 = vst [vmem:[#allocation1 + $0x2] ss:$4 sm:$0xff] %v1214_v40 }
 0x204   : > { %1366 = vst [vmem:[#allocation1 + $0x3] ss:$4 sm:$0xff] %v1278_v31  ;;  %928 = vrot.lane.b32.xlu2 %v3706_v33, %s1821_s5  ;;  %756 = vrot.lane.b32.xlu1 %v1731_v38, %s1820_s4  ;;  %v1734_v38 = vld [vmem:[%s1890_s25 + $0xc0] sm:$0xff] }
 0x205   : > { %841 = vrot.lane.b32.xlu0 %v3707_v63, %s1819_s3 }
 0x206   : > { %v3005_v1 = vpop.permute.xlu2 %734  ;;  %v820_v47 = vpop.permute.xlu1 %819 }
 0x207   : > { %v3007_v22 = vld.sshfl [vmem:[#allocation1 + $0x20] sm:$0xff pattern:$0x73625140]  ;;  %v818_v10 = vpop.permute.xlu0 %817 }
 0x208   : > { %1367 = vst [vmem:[#allocation1 + $0x20] ss:$4 sm:$0xff] %v1279_v45  ;;  %v1157_v30 = vsel %vm1150_vm8, %v1128_v41, %v818_v10  ;;  %v3714_v41 = vld [vmem:[#allocation60_spill] sm:$0xff] }
 0x209   : > { %v1186_v0 = vsel %vm1179_vm9, %v1157_v30, %v2930_v58  ;;  %v1129_v58 = vsel %vm1121_vm7, %v2778_v51, %v2906_v2  ;;  %v3709_v51 = vld [vmem:[#allocation17_spill] sm:$0xff]  ;;  %v3710_v2 = vld [vmem:[#allocation48_spill] sm:$0xff] }
 0x20a   : > { %v1215_v20 = vsel %vm1208_vm10, %v1186_v0, 1.0  ;;  %v1158_v50 = vsel %vm1150_vm8, %v1129_v58, %v820_v47  ;;  %v1735_v47 = vld [vmem:[%s1890_s25 + $0x50] sm:$0xff]  ;;  %v3715_v0 = vld [vmem:[#allocation72_spill] sm:$0xff] }
 0x20b   : > { %v1280_v14 = vrot.slane %v1215_v20, 2  ;;  %v1281_v53 = vrot.slane %v1215_v20, 4  ;;  %v1282_v32 = vrot.slane %v1215_v20, 6  ;;  %1368 = vst [vmem:[#allocation1 + $0x21] ss:$4 sm:$0xff] %v1215_v20 }
 0x20c   : > { %752 = vrot.lane.b32.xlu2 %v1732_v36, %s1820_s4  ;;  %843 = vrot.lane.b32.xlu1 %v3708_v18, %s1819_s3  ;;  %v3018_v29 = vld.sshfl [vmem:[#allocation1] sm:$0xff pattern:$0x73625140] }
 0x20d   : > { %1369 = vst [vmem:[#allocation1 + $0x22] ss:$4 sm:$0xff] %v1280_v14  ;;  %666 = vrot.lane.b32.xlu0 %v3696_v37, %s1818_s30 }
 0x20e   : > { %1370 = vst [vmem:[#allocation1 + $0x23] ss:$4 sm:$0xff] %v1281_v53  ;;  %v909_v57 = vpop.permute.xlu2 %908  ;;  %v651_v39 = vpop.permute.xlu1 %650 }
 0x20f   : > { %v907_v35 = vpop.permute.xlu0 %906  ;;  %1373 = vst [vmem:[#allocation1] ss:$4 sm:$0xff] %v1282_v32 }
 0x210   : > { %v1187_v19 = vsel %vm1179_vm9, %v1158_v50, %v907_v35  ;;  %v3717_v50 = vld [vmem:[#allocation24_spill] sm:$0xff]  ;;  %v3718_v35 = vld [vmem:[#allocation26_spill] sm:$0xff] }
 0x211   : > { %v1216_v59 = vsel %vm1208_vm10, %v1187_v19, 1.0  ;;  %v1736_v19 = vld [vmem:[%s1890_s25 + $0xc8] sm:$0xff] }
 0x212   : > { %v1283_v56 = vrot.slane %v1216_v59, 2  ;;  %v1284_v43 = vrot.slane %v1216_v59, 4  ;;  %1374 = vst [vmem:[#allocation1 + $0x1] ss:$4 sm:$0xff] %v1216_v59 }
 0x214   : > { %1375 = vst [vmem:[#allocation1 + $0x2] ss:$4 sm:$0xff] %v1283_v56  ;;  %926 = vrot.lane.b32.xlu2 %v3702_v12, %s1821_s5  ;;  %839 = vrot.lane.b32.xlu1 %v3709_v51, %s1819_s3  ;;  %v3713_v12 = vld [vmem:[#allocation95_spill] sm:$0xff] }
 0x215   : > { %1376 = vst [vmem:[#allocation1 + $0x3] ss:$4 sm:$0xff] %v1284_v43  ;;  %930 = vrot.lane.b32.xlu0 %v3710_v2, %s1821_s5  ;;  %v1044_v17 = vsel %vm1034_vm4, %v1015_v26, %v3713_v12  ;;  %v3088_v27 = vld.sshfl [vmem:[#allocation1 + $0x20] sm:$0xff pattern:$0x73625140]  ;;  %v3719_v26 = vld [vmem:[#allocation58_spill] sm:$0xff] }
 0x216   : > { %v3034_v37 = vpop.permute.xlu2 %740  ;;  %v824_v40 = vpop.permute.xlu1 %823  ;;  %v1073_v5 = vsel %vm1063_vm5, %v1044_v17, %v2668_v9  ;;  %v987_v9 = vsel %vm976_vm2, %v1735_v47, %v3714_v41  ;;  %v1739_v41 = vld [vmem:[%s1890_s25 + $0x60] sm:$0xff] }
 0x217   : > { %v653_v31 = vpop.permute.xlu0 %652  ;;  %v1102_v45 = vsel %vm1092_vm6, %v1073_v5, %v651_v39  ;;  %v1016_v20 = vsel %vm1005_vm3, %v987_v9, %v3715_v0  ;;  %v3721_v9 = vld [vmem:[#allocation65_spill] sm:$0xff] }
 0x218   : > { %v1131_v15 = vsel %vm1121_vm7, %v1102_v45, %v2953_v62 }
 0x219   : > { %v1160_v10 = vsel %vm1150_vm8, %v1131_v15, %v824_v40  ;;  %v1738_v15 = vld [vmem:[%s1890_s25 + $0xd8] sm:$0xff] }
 0x21c   : > { %758 = vrot.lane.b32.xlu2 %v1734_v38, %s1820_s4  ;;  %674 = vrot.lane.b32.xlu1 %v3710_v2, %s1818_s30  ;;  %v3065_v62 = vld.sshfl [vmem:[#allocation1] sm:$0xff pattern:$0x73625140]  ;;  %v1737_v38 = vld [vmem:[%s1890_s25 + $0xd0] sm:$0xff] }
 0x21d   : > { %672 = vrot.lane.b32.xlu0 %v3706_v33, %s1818_s30  ;;  %v3716_v33 = vld [vmem:[#allocation105_spill] sm:$0xff] }
 0x21e   : > { %v3054_v63 = vpop.permute.xlu2 %829  ;;  %v826_v28 = vpop.permute.xlu1 %825  ;;  %v1045_v53 = vsel %vm1034_vm4, %v1016_v20, %v3716_v33  ;;  %v3722_v33 = vld [vmem:[#allocation44_spill] sm:$0xff] }
 0x21f   : > { %v911_v30 = vpop.permute.xlu0 %910  ;;  %v1074_v36 = vsel %vm1063_vm5, %v1045_v53, %v2666_v21  ;;  %v1130_v21 = vsel %vm1121_vm7, %v2845_v13, %v3005_v1 }
 0x220   : > { %v1189_v14 = vsel %vm1179_vm9, %v1160_v10, %v911_v30  ;;  %v1103_v39 = vsel %vm1092_vm6, %v1074_v36, %v653_v31  ;;  %v989_v10 = vsel %vm976_vm2, %v1739_v41, %v3721_v9  ;;  %v3732_v9 = vld [vmem:[#allocation84_spill] sm:$0xff] }
 0x221   : > { %v1218_v32 = vsel %vm1208_vm10, %v1189_v14, 1.0  ;;  %v1132_v59 = vsel %vm1121_vm7, %v1103_v39, %v2981_v23  ;;  %v1740_v14 = vld [vmem:[%s1890_s25 + $0x58] sm:$0xff] }
 0x222   : > { %v1288_v18 = vrot.slane %v1218_v32, 2  ;;  %v1289_v58 = vrot.slane %v1218_v32, 4  ;;  %1383 = vst [vmem:[#allocation1] ss:$4 sm:$0xff] %v1218_v32  ;;  %v1161_v51 = vsel %vm1150_vm8, %v1132_v59, %v826_v28  ;;  %v988_v53 = vsel %vm976_vm2, %v1740_v14, %v3722_v33  ;;  %v3723_v32 = vld [vmem:[#allocation85_spill] sm:$0xff] }
 0x223   : > { %v1018_v36 = vsel %vm1005_vm3, %v989_v10, %v3723_v32  ;;  %v629_v10 = vrot.slane %v3732_v9, 2  ;;  %v1741_v32 = vld [vmem:[%s1890_s25 + $0x68] sm:$0xff] }
 0x224   : > { %1384 = vst [vmem:[#allocation1 + $0x1] ss:$4 sm:$0xff] %v1288_v18  ;;  %847 = vrot.lane.b32.xlu2 %v3717_v50, %s1819_s3  ;;  %845 = vrot.lane.b32.xlu1 %v3718_v35, %s1819_s3  ;;  %v3725_v50 = vld [vmem:[#allocation96_spill] sm:$0xff] }
 0x225   : > { %1385 = vst [vmem:[#allocation1 + $0x2] ss:$4 sm:$0xff] %v1289_v58  ;;  %760 = vrot.lane.b32.xlu0 %v1736_v19, %s1820_s4  ;;  %v3724_v58 = vld [vmem:[#allocation86_spill] sm:$0xff]  ;;  %v1047_v35 = vsel %vm1034_vm4, %v1018_v36, %v3725_v50  ;;  %v3726_v19 = vld [vmem:[#allocation104_spill] sm:$0xff] }
 0x226   : > { %v3082_v56 = vpop.permute.xlu2 %658  ;;  %v822_v43 = vpop.permute.xlu1 %821  ;;  %v1017_v39 = vsel %vm1005_vm3, %v988_v53, %v3724_v58  ;;  %v1076_v59 = vsel %vm1063_vm5, %v1047_v35, %v2687_v25  ;;  %v3733_v36 = vld [vmem:[#allocation64_spill] sm:$0xff]  ;;  %v3734_v50 = vld [vmem:[#allocation74_spill] sm:$0xff] }
 0x227   : > { %v1159_v2 = vsel %vm1150_vm8, %v1130_v21, %v822_v43  ;;  %v913_v40 = vpop.permute.xlu0 %912  ;;  %v1046_v21 = vsel %vm1034_vm4, %v1017_v39, %v3726_v19  ;;  %v172_v19 = vld [vmem:[%s1890_s25 + $0xf0] sm:$0xff] }
 0x228   : > { %v1188_v7 = vsel %vm1179_vm9, %v1159_v2, %v909_v57  ;;  %v1190_v42 = vsel %vm1179_vm9, %v1161_v51, %v913_v40  ;;  %v3720_v57 = vld [vmem:[#allocation55_spill] sm:$0xff]  ;;  %v1075_v43 = vsel %vm1063_vm5, %v1046_v21, %v2628_v24 }
 0x229   : > { %v1217_v31 = vsel %vm1208_vm10, %v1188_v7, 1.0  ;;  %v1219_v13 = vsel %vm1208_vm10, %v1190_v42, 1.0  ;;  %v3727_v7 = vld [vmem:[#allocation23_spill] sm:$0xff] }
 0x22a   : > { %v1285_v23 = vrot.slane %v1217_v31, 2  ;;  %v1286_v1 = vrot.slane %v1217_v31, 4  ;;  %v1287_v44 = vrot.slane %v1217_v31, 6  ;;  %1377 = vst [vmem:[#allocation1 + $0x20] ss:$4 sm:$0xff] %v1217_v31  ;;  %v1290_v45 = vrot.slane %v1219_v13, 2 }
 0x22b   : > { %1386 = vst [vmem:[#allocation1 + $0x3] ss:$4 sm:$0xff] %v1219_v13  ;;  %v1291_v47 = vrot.slane %v1219_v13, 4  ;;  %v1292_v30 = vrot.slane %v1219_v13, 6  ;;  %v3728_v42 = vld [vmem:[#allocation63_spill] sm:$0xff]  ;;  %v3729_v31 = vld [vmem:[#allocation25_spill] sm:$0xff] }
 0x22c   : > { %1378 = vst [vmem:[#allocation1 + $0x21] ss:$4 sm:$0xff] %v1285_v23  ;;  %676 = vrot.lane.b32.xlu2 %v3719_v26, %s1818_s30  ;;  %934 = vrot.lane.b32.xlu1 %v3720_v57, %s1821_s5  ;;  %v3735_v21 = vld [vmem:[#allocation107_spill] sm:$0xff] }
 0x22d   : > { %1379 = vst [vmem:[#allocation1 + $0x22] ss:$4 sm:$0xff] %v1286_v1  ;;  %932 = vrot.lane.b32.xlu0 %v3719_v26, %s1821_s5 }
 0x22e   : > { %1380 = vst [vmem:[#allocation1 + $0x23] ss:$4 sm:$0xff] %v1287_v44  ;;  %v3098_v12 = vpop.permute.xlu2 %746  ;;  %v657_v17 = vpop.permute.xlu1 %656 }
 0x22f   : > { %v655_v5 = vpop.permute.xlu0 %654  ;;  %v1105_v51 = vsel %vm1092_vm6, %v1076_v59, %v657_v17 }
 0x230   : > { %v1104_v2 = vsel %vm1092_vm6, %v1075_v43, %v655_v5  ;;  %v3736_v43 = vld [vmem:[#allocation101_spill] sm:$0xff] }
 0x231   : > { %v1133_v25 = vsel %vm1121_vm7, %v1104_v2, %v3034_v37 }
 0x232   : > { %v3143_v26 = vld.sshfl [vmem:[#allocation1] sm:$0xff pattern:$0x73625140] }
 0x234   : > { %762 = vrot.lane.b32.xlu1 %v1737_v38, %s1820_s4  ;;  %764 = vrot.lane.b32.xlu2 %v1738_v15, %s1820_s4  ;;  %v3730_v15 = vld [vmem:[#allocation61_spill] sm:$0xff] }
 0x235   : > { %v3104_v28 = vld.sshfl [vmem:[#allocation1 + $0x20] sm:$0xff pattern:$0x73625140]  ;;  %678 = vrot.lane.b32.xlu0 %v3720_v57, %s1818_s30 }
 0x236   : > { %1387 = vst [vmem:[#allocation1 + $0x20] ss:$4 sm:$0xff] %v1290_v45  ;;  %v3111_v0 = vpop.permute.xlu2 %918  ;;  %v828_v20 = vpop.permute.xlu1 %827 }
 0x237   : > { %1388 = vst [vmem:[#allocation1 + $0x21] ss:$4 sm:$0xff] %v1291_v47  ;;  %v743_v18 = vpop.permute.xlu0 %742  ;;  %v1162_v23 = vsel %vm1150_vm8, %v1133_v25, %v828_v20  ;;  %v3731_v47 = vld [vmem:[#allocation83_spill] sm:$0xff] }
 0x238   : > { %1389 = vst [vmem:[#allocation1 + $0x22] ss:$4 sm:$0xff] %v1292_v30  ;;  %v1134_v40 = vsel %vm1121_vm7, %v1105_v51, %v743_v18  ;;  %v3157_v41 = vrot.slane %v3731_v47, 2  ;;  %v990_v18 = vsel %vm976_vm2, %v1741_v32, %v3733_v36  ;;  %v3179_v51 = vld [vmem:[%s1890_s25 + $0xf8] sm:$0xff] }
 0x239   : > { %v1163_v24 = vsel %vm1150_vm8, %v1134_v40, %v3054_v63  ;;  %v1019_v35 = vsel %vm1005_vm3, %v990_v18, %v3734_v50  ;;  %v802_v40 = vrot.slane %v172_v19, 1 }
 0x23a   : > { %v3169_v39 = vsel %vm329_vm1, %v629_v10, %v3157_v41  ;;  %v1048_v59 = vsel %vm1034_vm4, %v1019_v35, %v3735_v21  ;;  %v3741_v35 = vld [vmem:[#allocation66_spill] sm:$0xff] }
 0x23b   : > { %v1077_v2 = vsel %vm1063_vm5, %v1048_v59, %v2682_v16  ;;  %v3742_v59 = vld [vmem:[#allocation77_spill] sm:$0xff] }
 0x23c   : > { %851 = vrot.lane.b32.xlu1 %v3727_v7, %s1819_s3  ;;  %936 = vrot.lane.b32.xlu2 %v3728_v42, %s1821_s5  ;;  %v803_v7 = vrot.slane %v3179_v51, 1 }
 0x23d   : > { %849 = vrot.lane.b32.xlu0 %v3729_v31, %s1819_s3  ;;  %v1106_v31 = vsel %vm1092_vm6, %v1077_v2, %v3082_v56 }
 0x23e   : > { %v917_v13 = vpop.permute.xlu1 %916  ;;  %v3145_v57 = vpop.permute.xlu2 %750  ;;  %v804_v56 = vsel %vm202_vm0, %v802_v40, %v803_v7 }
 0x23f   : > { %v1192_v1 = vsel %vm1179_vm9, %v1163_v24, %v917_v13  ;;  %v915_v44 = vpop.permute.xlu0 %914  ;;  %v1742_v13 = vld [vmem:[%s1890_s25 + $0x70] sm:$0xff]  ;;  %v3737_v24 = vld [vmem:[#allocation49_spill] sm:$0xff] }
 0x240   : > { %v1221_v17 = vsel %vm1208_vm10, %v1192_v1, 1.0  ;;  %v1191_v5 = vsel %vm1179_vm9, %v1162_v23, %v915_v44  ;;  %v991_v23 = vsel %vm976_vm2, %v1742_v13, %v3737_v24 }
 0x241   : > { %v1295_v45 = vrot.slane %v1221_v17, 2  ;;  %1395 = vst [vmem:[#allocation1 + $0x2] ss:$4 sm:$0xff] %v1221_v17  ;;  %v1220_v37 = vsel %vm1208_vm10, %v1191_v5, 1.0  ;;  %v1296_v14 = vrot.slane %v1221_v17, 4  ;;  %v1297_v33 = vrot.slane %v1221_v17, 6 }
 0x242   : > { %v1293_v38 = vrot.slane %v1220_v37, 2  ;;  %v1294_v63 = vrot.slane %v1220_v37, 4  ;;  %1390 = vst [vmem:[#allocation1 + $0x23] ss:$4 sm:$0xff] %v1220_v37  ;;  %v3738_v17 = vld [vmem:[#allocation88_spill] sm:$0xff] }
 0x243   : > { %1396 = vst [vmem:[#allocation1 + $0x3] ss:$4 sm:$0xff] %v1295_v45  ;;  %v1020_v16 = vsel %vm1005_vm3, %v991_v23, %v3738_v17  ;;  %v3739_v45 = vld [vmem:[#allocation106_spill] sm:$0xff]  ;;  %v3744_v17 = vld [vmem:[#allocation103_spill] sm:$0xff] }
 0x244   : > { %1393 = vst [vmem:[#allocation1] ss:$4 sm:$0xff] %v1293_v38  ;;  %682 = vrot.lane.b32.xlu1 %v3730_v15, %s1818_s30  ;;  %768 = vrot.lane.b32.xlu2 %v3731_v47, %s1820_s4  ;;  %v1049_v37 = vsel %vm1034_vm4, %v1020_v16, %v3739_v45  ;;  %v1744_v16 = vld [vmem:[%s1890_s25 + $0xe0] sm:$0xff] }
 0x245   : > { %1394 = vst [vmem:[#allocation1 + $0x1] ss:$4 sm:$0xff] %v1294_v63  ;;  %938 = vrot.lane.b32.xlu0 %v3730_v15, %s1821_s5  ;;  %v3740_v63 = vld [vmem:[#allocation29_spill] sm:$0xff] }
 0x246   : > { %v745_v30 = vpop.permute.xlu1 %744  ;;  %v3165_v58 = vpop.permute.xlu2 %662  ;;  %v1078_v15 = vsel %vm1063_vm5, %v1049_v37, %v3740_v63 }
 0x247   : > { %v661_v20 = vpop.permute.xlu0 %660  ;;  %v1135_v1 = vsel %vm1121_vm7, %v1106_v31, %v745_v30 }
 0x248   : > { %v1107_v9 = vsel %vm1092_vm6, %v1078_v15, %v661_v20  ;;  %v890_v20 = vrot.slane %v3179_v51, 2  ;;  %v1745_v15 = vld [vmem:[%s1890_s25 + $0x78] sm:$0xff] }
 0x249   : > { %v3160_v53 = vld.sshfl [vmem:[#allocation1 + $0x20] sm:$0xff pattern:$0x73625140]  ;;  %v1136_v32 = vsel %vm1121_vm7, %v1107_v9, %v3098_v12 }
 0x24a   : > { %1397 = vst [vmem:[#allocation1 + $0x20] ss:$4 sm:$0xff] %v1296_v14  ;;  %v3743_v12 = vld [vmem:[#allocation28_spill] sm:$0xff] }
 0x24b   : > { %1398 = vst [vmem:[#allocation1 + $0x21] ss:$4 sm:$0xff] %v1297_v33 }
 0x24c   : > { %855 = vrot.lane.b32.xlu1 %v3736_v43, %s1819_s3  ;;  %770 = vrot.lane.b32.xlu2 %v172_v19, %s1820_s4  ;;  %v3212_v33 = vld.sshfl [vmem:[#allocation1] sm:$0xff pattern:$0x73625140] }
 0x24d   : > { %684 = vrot.lane.b32.xlu0 %v3169_v39, %s1818_s30 }
 0x24e   : > { %v834_v25 = vpop.permute.xlu1 %833  ;;  %v3207_v14 = vpop.permute.xlu2 %922 }
 0x24f   : > { %v832_v44 = vpop.permute.xlu0 %831  ;;  %v1165_v18 = vsel %vm1150_vm8, %v1136_v32, %v834_v25 }
 0x250   : > { %v1164_v5 = vsel %vm1150_vm8, %v1135_v1, %v832_v44 }
 0x251   : > { %v1193_v38 = vsel %vm1179_vm9, %v1164_v5, %v3111_v0  ;;  %v889_v0 = vrot.slane %v172_v19, 2 }
 0x252   : > { %v1222_v47 = vsel %vm1208_vm10, %v1193_v38, 1.0 }
 0x253   : > { %v1298_v10 = vrot.slane %v1222_v47, 2  ;;  %v1299_v30 = vrot.slane %v1222_v47, 4  ;;  %1399 = vst [vmem:[#allocation1 + $0x22] ss:$4 sm:$0xff] %v1222_v47  ;;  %v891_v40 = vsel %vm329_vm1, %v889_v0, %v890_v20  ;;  %v3745_v47 = vld [vmem:[#allocation67_spill] sm:$0xff] }
 0x254   : > { %680 = vrot.lane.b32.xlu1 %v3728_v42, %s1818_s30  ;;  %857 = vrot.lane.b32.xlu2 %v804_v56, %s1819_s3  ;;  %v1743_v42 = vld [vmem:[%s1890_s25 + $0x80] sm:$0xff]  ;;  %v992_v9 = vsel %vm976_vm2, %v1745_v15, %v3745_v47  ;;  %v3746_v0 = vld [vmem:[#allocation87_spill] sm:$0xff] }
 0x255   : > { %1400 = vst [vmem:[#allocation1 + $0x23] ss:$4 sm:$0xff] %v1298_v10  ;;  %942 = vrot.lane.b32.xlu0 %v3157_v41, %s1821_s5  ;;  %v993_v19 = vsel %vm976_vm2, %v1743_v42, %v3741_v35  ;;  %v1021_v32 = vsel %vm1005_vm3, %v992_v9, %v3746_v0  ;;  %v3751_v0 = vld [vmem:[#allocation56_spill] sm:$0xff] }
 0x256   : > { %1403 = vst [vmem:[#allocation1] ss:$4 sm:$0xff] %v1299_v30  ;;  %v665_v36 = vpop.permute.xlu1 %664  ;;  %v1022_v43 = vsel %vm1005_vm3, %v993_v19, %v3742_v59  ;;  %v3240_v5 = vpop.permute.xlu2 %670 }
 0x257   : > { %v921_v50 = vpop.permute.xlu0 %920  ;;  %v1051_v31 = vsel %vm1034_vm4, %v1022_v43, %v3743_v12 }
 0x258   : > { %v1194_v21 = vsel %vm1179_vm9, %v1165_v18, %v921_v50  ;;  %v1080_v23 = vsel %vm1063_vm5, %v1051_v31, %v2701_v34  ;;  %v1746_v31 = vld [vmem:[%s1890_s25 + $0x90] sm:$0xff] }
 0x259   : > { %v1223_v2 = vsel %vm1208_vm10, %v1194_v21, 1.0  ;;  %v1109_v1 = vsel %vm1092_vm6, %v1080_v23, %v665_v36  ;;  %v3750_v23 = vld [vmem:[#allocation102_spill] sm:$0xff] }
 0x25a   : > { %v1300_v13 = vrot.slane %v1223_v2, 2  ;;  %v1301_v25 = vrot.slane %v1223_v2, 4  ;;  %v1302_v24 = vrot.slane %v1223_v2, 6  ;;  %1404 = vst [vmem:[#allocation1 + $0x1] ss:$4 sm:$0xff] %v1223_v2  ;;  %v1138_v34 = vsel %vm1121_vm7, %v1109_v1, %v3145_v57  ;;  %v3747_v57 = vld [vmem:[#allocation98_spill] sm:$0xff] }
 0x25b   : > { %v1050_v50 = vsel %vm1034_vm4, %v1021_v32, %v3747_v57  ;;  %v3752_v57 = vld [vmem:[#allocation91_spill] sm:$0xff] }
 0x25c   : > { %v3233_v44 = vld.sshfl [vmem:[#allocation1 + $0x20] sm:$0xff pattern:$0x73625140]  ;;  %1405 = vst [vmem:[#allocation1 + $0x2] ss:$4 sm:$0xff] %v1300_v13  ;;  %944 = vrot.lane.b32.xlu1 %v891_v40, %s1821_s5  ;;  %853 = vrot.lane.b32.xlu2 %v3744_v17, %s1819_s3  ;;  %v1079_v42 = vsel %vm1063_vm5, %v1050_v50, %v2706_v60  ;;  %v3748_v13 = vld [vmem:[#allocation70_spill] sm:$0xff] }
 0x25d   : > { %1406 = vst [vmem:[#allocation1 + $0x3] ss:$4 sm:$0xff] %v1301_v25  ;;  %766 = vrot.lane.b32.xlu0 %v1744_v16, %s1820_s4  ;;  %v1108_v19 = vsel %vm1092_vm6, %v1079_v42, %v3165_v58  ;;  %v995_v25 = vsel %vm976_vm2, %v1746_v31, %v3748_v13  ;;  %v1748_v42 = vld [vmem:[%s1890_s25 + $0x98] sm:$0xff] }
 0x25e   : > { %1407 = vst [vmem:[#allocation1 + $0x20] ss:$4 sm:$0xff] %v1302_v24  ;;  %v925_v45 = vpop.permute.xlu1 %924  ;;  %v929_v21 = vpop.permute.xlu2 %928 }
 0x25f   : > { %v838_v37 = vpop.permute.xlu0 %837 }
 0x260   : > { %v1167_v38 = vsel %vm1150_vm8, %v1138_v34, %v838_v37 }
 0x261   : > { %v1196_v56 = vsel %vm1179_vm9, %v1167_v38, %v925_v45 }
 0x262   : > { %v1225_v63 = vsel %vm1208_vm10, %v1196_v56, 1.0 }
 0x263   : > { %v1305_v10 = vrot.slane %v1225_v63, 2  ;;  %v1306_v30 = vrot.slane %v1225_v63, 4  ;;  %v1307_v18 = vrot.slane %v1225_v63, 6 }
 0x264   : > { %v3252_v36 = vld.sshfl [vmem:[#allocation1] sm:$0xff pattern:$0x73625140]  ;;  %686 = vrot.lane.b32.xlu1 %v3157_v41, %s1818_s30  ;;  %772 = vrot.lane.b32.xlu2 %v3179_v51, %s1820_s4  ;;  %s1770_s30 = scalar_lea.hbm %s3466_s2, 32 }
 0x265   : > { %1413 = vst [vmem:[#allocation1] ss:$4 sm:$0xff] %v1225_v63  ;;  %940 = vrot.lane.b32.xlu0 %v3169_v39, %s1821_s5 }
 0x266   : > { %1414 = vst [vmem:[#allocation1 + $0x1] ss:$4 sm:$0xff] %v1305_v10  ;;  %v836_v35 = vpop.permute.xlu1 %835  ;;  %v753_v17 = vpop.permute.xlu2 %752 }
 0x267   : > { %1415 = vst [vmem:[#allocation1 + $0x2] ss:$4 sm:$0xff] %v1306_v30  ;;  %v749_v41 = vpop.permute.xlu0 %748  ;;  %v1747_v30 = vld [vmem:[%s1890_s25 + $0x88] sm:$0xff] }
 0x268   : > { %1416 = vst [vmem:[#allocation1 + $0x3] ss:$4 sm:$0xff] %v1307_v18  ;;  %v1137_v59 = vsel %vm1121_vm7, %v1108_v19, %v749_v41  ;;  %v994_v32 = vsel %vm976_vm2, %v1747_v30, %v3751_v0  ;;  %v3754_v41 = vld [vmem:[#allocation27_spill] sm:$0xff] }
 0x269   : > { %v1166_v43 = vsel %vm1150_vm8, %v1137_v59, %v836_v35  ;;  %v1023_v50 = vsel %vm1005_vm3, %v994_v32, %v3752_v57  ;;  %v3753_v35 = vld [vmem:[#allocation68_spill] sm:$0xff]  ;;  %v3759_v32 = vld [vmem:[#allocation93_spill] sm:$0xff] }
 0x26a   : > { %v1195_v39 = vsel %vm1179_vm9, %v1166_v43, %v3207_v14  ;;  %v3749_v14 = vld [vmem:[#allocation90_spill] sm:$0xff]  ;;  %v996_v19 = vsel %vm976_vm2, %v1748_v42, %v3753_v35  ;;  %v3755_v59 = vld [vmem:[#allocation80_spill] sm:$0xff] }
 0x26b   : > { %v1224_v2 = vsel %vm1208_vm10, %v1195_v39, 1.0  ;;  %v1024_v24 = vsel %vm1005_vm3, %v995_v25, %v3749_v14  ;;  %v1025_v43 = vsel %vm1005_vm3, %v996_v19, %v3755_v59  ;;  %v3756_v39 = vld [vmem:[#allocation33_spill] sm:$0xff]  ;;  %v3760_v57 = vld [vmem:[#allocation32_spill] sm:$0xff] }
 0x26c   : > { %v1303_v60 = vrot.slane %v1224_v2, 2  ;;  %v1304_v40 = vrot.slane %v1224_v2, 4  ;;  %1408 = vst [vmem:[#allocation1 + $0x21] ss:$4 sm:$0xff] %v1224_v2  ;;  %946 = vrot.lane.b32.xlu1 %v890_v20, %s1821_s5  ;;  %v1053_v1 = vsel %vm1034_vm4, %v1024_v24, %v3750_v23  ;;  %v3761_v42 = vld [vmem:[#allocation108_spill] sm:$0xff] }
 0x26d   : > { %859 = vrot.lane.b32.xlu0 %v803_v7, %s1819_s3  ;;  %v1082_v20 = vsel %vm1063_vm5, %v1053_v1, %v2718_v49 }
 0x26e   : > { %1409 = vst [vmem:[#allocation1 + $0x22] ss:$4 sm:$0xff] %v1303_v60  ;;  %v755_v58 = vpop.permute.xlu1 %754  ;;  %v927_v9 = vpop.permute.xlu2 %926  ;;  %v3757_v60 = vld [vmem:[#allocation34_spill] sm:$0xff] }
 0x26f   : > { %1410 = vst [vmem:[#allocation1 + $0x23] ss:$4 sm:$0xff] %v1304_v40  ;;  %v669_v12 = vpop.permute.xlu0 %668  ;;  %v1421_v49 = vld.sshfl [vmem:[#allocation1] sm:$0xff pattern:$0x73625140]  ;;  %v1054_v40 = vsel %vm1034_vm4, %v1025_v43, %v3757_v60 }
 0x270   : > { %v1111_v51 = vsel %vm1092_vm6, %v1082_v20, %v669_v12  ;;  %v1083_v12 = vsel %vm1063_vm5, %v1054_v40, %v2716_v61 }
 0x271   : > { %v1140_v16 = vsel %vm1121_vm7, %v1111_v51, %v755_v58  ;;  %v1112_v31 = vsel %vm1092_vm6, %v1083_v12, %v3240_v5 }
 0x276   : > { %v757_v7 = vpop.permute.xlu1 %756  ;;  %v3288_v38 = vld.sshfl [vmem:[#allocation1 + $0x20] sm:$0xff pattern:$0x73625140]  ;;  %v759_v13 = vpop.permute.xlu2 %758 }
 0x277   : > { %v842_v45 = vpop.permute.xlu0 %841  ;;  %v1141_v25 = vsel %vm1121_vm7, %v1112_v31, %v757_v7 }
 0x278   : > { %v1169_v34 = vsel %vm1150_vm8, %v1140_v16, %v842_v45 }
 0x279   : > { %v1198_v37 = vsel %vm1179_vm9, %v1169_v34, %v929_v21  ;;  %v1052_v21 = vsel %vm1034_vm4, %v1023_v50, %v3754_v41 }
 0x27a   : > { %v1227_v56 = vsel %vm1208_vm10, %v1198_v37, 1.0  ;;  %v1081_v2 = vsel %vm1063_vm5, %v1052_v21, %v3756_v39 }
 0x27b   : > { %v1310_v63 = vrot.slane %v1227_v56, 2  ;;  %v1311_v15 = vrot.slane %v1227_v56, 4  ;;  %v1312_v47 = vrot.slane %v1227_v56, 6  ;;  %1420 = vst [vmem:[#allocation1 + $0x23] ss:$4 sm:$0xff] %v1227_v56 }
 0x27d   : > { %1423 = vst [vmem:[#allocation1] ss:$4 sm:$0xff] %v1310_v63 }
 0x27e   : > { %1424 = vst [vmem:[#allocation1 + $0x1] ss:$4 sm:$0xff] %v1311_v15  ;;  %v844_v10 = vpop.permute.xlu1 %843  ;;  %v848_v37 = vpop.permute.xlu2 %847 }
 0x27f   : > { %1425 = vst [vmem:[#allocation1 + $0x2] ss:$4 sm:$0xff] %v1312_v47  ;;  %v667_v18 = vpop.permute.xlu0 %666  ;;  %v1170_v23 = vsel %vm1150_vm8, %v1141_v25, %v844_v10  ;;  %v3758_v10 = vld [vmem:[#allocation59_spill] sm:$0xff] }
 0x280   : > { %v1110_v58 = vsel %vm1092_vm6, %v1081_v2, %v667_v18 }
 0x281   : > { %v1139_v24 = vsel %vm1121_vm7, %v1110_v58, %v753_v17 }
 0x286   : > { %v840_v14 = vpop.permute.xlu1 %839  ;;  %v677_v19 = vpop.permute.xlu2 %676 }
 0x287   : > { %v1168_v1 = vsel %vm1150_vm8, %v1139_v24, %v840_v14  ;;  %v931_v20 = vpop.permute.xlu0 %930 }
 0x288   : > { %v1197_v51 = vsel %vm1179_vm9, %v1168_v1, %v927_v9  ;;  %v1199_v16 = vsel %vm1179_vm9, %v1170_v23, %v931_v20  ;;  %v1749_v9 = vld [vmem:[%s1890_s25 + $0xa0] sm:$0xff]  ;;  %s1579_s25 = sshll.u32 %s1575_s23, 4  ;;  %s1580_s25 = int_to_ptr.hbm [resolvable:$true] %s1579_s25 }
 0x289   : > { %v1226_v61 = vsel %vm1208_vm10, %v1197_v51, 1.0  ;;  %v1228_v45 = vsel %vm1208_vm10, %v1199_v16, 1.0  ;;  %v997_v30 = vsel %vm976_vm2, %v1749_v9, %v3758_v10  ;;  %v1115_v16 = vsel %vm1092_vm6, %v2743_v46, %v677_v19  ;;  %s1764_s27 = sshra.s32 %s1580_s25, 4  ;;  %s1765_s27 = int_to_ptr.hbm [resolvable:$true] %s1764_s27 }
 0x28a   : > { %v1308_v5 = vrot.slane %v1226_v61, 2  ;;  %v1309_v34 = vrot.slane %v1226_v61, 4  ;;  %1417 = vst [vmem:[#allocation1 + $0x20] ss:$4 sm:$0xff] %v1226_v61  ;;  %v1313_v56 = vrot.slane %v1228_v45, 2  ;;  %v1314_v15 = vrot.slane %v1228_v45, 4  ;;  %p1771_p0 = scmp.lt.s32.totalorder %s1765_s27, %s3466_s2 }
 0x28b   : > { %1426 = vst [vmem:[#allocation1 + $0x3] ss:$4 sm:$0xff] %v1228_v45  ;;  %v1026_v18 = vsel %vm1005_vm3, %v997_v30, %v3759_v32  ;;  %s1766_s28 = scalar_lea.hbm %s1765_s27, 16 }
 0x28c   : > { %1418 = vst [vmem:[#allocation1 + $0x21] ss:$4 sm:$0xff] %v1308_v5  ;;  %v1055_v50 = vsel %vm1034_vm4, %v1026_v18, %v3760_v57  ;;  %p1767_p11 = scmp.ne.s32.totalorder %s1765_s27, %s1766_s28  ;;  %p1772_p1 = scmp.lt.s32.totalorder %s1770_s30, %s1766_s28 }
 0x28d   : > { %1419 = vst [vmem:[#allocation1 + $0x22] ss:$4 sm:$0xff] %v1309_v34  ;;  %v1084_v35 = vsel %vm1063_vm5, %v1055_v50, %v3761_v42 }
 0x28e   : > { %v675_v17 = vpop.permute.xlu1 %674  ;;  %v765_v24 = vpop.permute.xlu2 %764  ;;  %p1768_p12 = pnand %p1767_p11, %p1875_p5  ;;  %p1773_p2 = por %p1772_p1, %p1771_p0 }
 0x28f   : > { %v673_v7 = vpop.permute.xlu0 %672  ;;  %v1114_v41 = vsel %vm1092_vm6, %v2746_v48, %v675_v17 }
 0x290   : > { %v1113_v21 = vsel %vm1092_vm6, %v1084_v35, %v673_v7  ;;  %p1769_p13 = pneg %p1768_p12 }
 0x291   : > { %v1142_v43 = vsel %vm1121_vm7, %v1113_v21, %v759_v13 }
 0x292   : > { %v3341_v58 = vld.sshfl [vmem:[#allocation1] sm:$0xff pattern:$0x73625140]  ;;  %p1774_p3 = pnand %p1773_p2, %p1769_p13 }
 0x294   : > { %v1422_v63 = vld.sshfl [vmem:[#allocation1 + $0x20] sm:$0xff pattern:$0x73625140] }
 0x295   : > { %1427 = vst [vmem:[#allocation1 + $0x20] ss:$4 sm:$0xff] %v1313_v56  ;;  %1646 = vmatpush.xpose.msk.msra.mxu0 %vm1466_vm11, %v1422_v63 }
 0x296   : > { %1428 = vst [vmem:[#allocation1 + $0x21] ss:$4 sm:$0xff] %v1314_v15  ;;  %v846_v47 = vpop.permute.xlu1 %845 }
 0x297   : > { %v761_v0 = vpop.permute.xlu0 %760 }
 0x298   : > { %v1143_v59 = vsel %vm1121_vm7, %v1114_v41, %v761_v0 }
 0x299   : > { %1647 = vmatpush.xpose.msk.msra.mxu0 %vm1466_vm11, %v1421_v49  ;;  %v1172_v2 = vsel %vm1150_vm8, %v1143_v59, %v848_v37  ;;  %v1171_v49 = vsel %vm1150_vm8, %v1142_v43, %v846_v47 }
 0x29d   : > { %1648 = vmatpush.xpose.msk.msra.mxu0 %vm1466_vm11, %v3288_v38 }
 0x29e   : > { %v935_v39 = vpop.permute.xlu1 %934 }
 0x29f   : > { %v1201_v60 = vsel %vm1179_vm9, %v1172_v2, %v935_v39  ;;  %v933_v40 = vpop.permute.xlu0 %932 }
 0x2a0   : > { %v1230_v48 = vsel %vm1208_vm10, %v1201_v60, 1.0  ;;  %v1200_v12 = vsel %vm1179_vm9, %v1171_v49, %v933_v40 }
 0x2a1   : > { %v1318_v31 = vrot.slane %v1230_v48, 2  ;;  %1435 = vst [vmem:[#allocation1 + $0x2] ss:$4 sm:$0xff] %v1230_v48  ;;  %v1229_v38 = vsel %vm1208_vm10, %v1200_v12, 1.0  ;;  %1649 = vmatpush.xpose.msk.msra.mxu0 %vm1466_vm11, %v3252_v36  ;;  %v1319_v20 = vrot.slane %v1230_v48, 4  ;;  %v937_v36 = vpop.permute.xlu2 %936 }
 0x2a2   : > { %v1315_v13 = vrot.slane %v1229_v38, 2  ;;  %v1316_v25 = vrot.slane %v1229_v38, 4  ;;  %v1317_v14 = vrot.slane %v1229_v38, 6  ;;  %1429 = vst [vmem:[#allocation1 + $0x22] ss:$4 sm:$0xff] %v1229_v38 }
 0x2a3   : > { %1436 = vst [vmem:[#allocation1 + $0x3] ss:$4 sm:$0xff] %v1318_v31 }
 0x2a4   : > { %1430 = vst [vmem:[#allocation1 + $0x23] ss:$4 sm:$0xff] %v1315_v13 }
 0x2a5   : > { %1433 = vst [vmem:[#allocation1] ss:$4 sm:$0xff] %v1316_v25  ;;  %1650 = vmatpush.xpose.msk.msra.mxu0 %vm1466_vm11, %v3233_v44 }
 0x2a6   : > { %1434 = vst [vmem:[#allocation1 + $0x1] ss:$4 sm:$0xff] %v1317_v14  ;;  %v763_v23 = vpop.permute.xlu1 %762 }
 0x2a7   : > { %v679_v1 = vpop.permute.xlu0 %678  ;;  %v1144_v44 = vsel %vm1121_vm7, %v1115_v16, %v763_v23 }
 0x2a8   : > { %v1116_v17 = vsel %vm1092_vm6, %v2685_v55, %v679_v1 }
 0x2a9   : > { %1651 = vmatpush.xpose.msk.msra.mxu0 %vm1466_vm11, %v3212_v33  ;;  %v1145_v46 = vsel %vm1121_vm7, %v1116_v17, %v765_v24  ;;  %v769_v56 = vpop.permute.xlu2 %768 }
 0x2ab   : > { %v3352_v51 = vld.sshfl [vmem:[#allocation1 + $0x20] sm:$0xff pattern:$0x73625140] }
 0x2ac   : > { %1437 = vst [vmem:[#allocation1 + $0x20] ss:$4 sm:$0xff] %v1319_v20 }
 0x2ad   : > { %1652 = vmatpush.xpose.msk.msra.mxu0 %vm1466_vm11, %v3160_v53  ;;  %v3369_v15 = vld.sshfl [vmem:[#allocation1] sm:$0xff pattern:$0x73625140] }
 0x2ae   : > { %v852_v61 = vpop.permute.xlu1 %851 }
 0x2af   : > { %v850_v45 = vpop.permute.xlu0 %849 }
 0x2b0   : > { %v1173_v5 = vsel %vm1150_vm8, %v1144_v44, %v850_v45 }
 0x2b1   : > { %v1202_v34 = vsel %vm1179_vm9, %v1173_v5, %v937_v36  ;;  %1653 = vmatpush.xpose.msk.msra.mxu0 %vm1466_vm11, %v3143_v26  ;;  %v1174_v26 = vsel %vm1150_vm8, %v1145_v46, %v852_v61  ;;  %v771_v32 = vpop.permute.xlu2 %770 }
 0x2b2   : > { %v1231_v33 = vsel %vm1208_vm10, %v1202_v34, 1.0 }
 0x2b3   : > { %v1320_v53 = vrot.slane %v1231_v33, 2  ;;  %v1321_v7 = vrot.slane %v1231_v33, 4  ;;  %v1322_v37 = vrot.slane %v1231_v33, 6  ;;  %1438 = vst [vmem:[#allocation1 + $0x21] ss:$4 sm:$0xff] %v1231_v33 }
 0x2b5   : > { %1439 = vst [vmem:[#allocation1 + $0x22] ss:$4 sm:$0xff] %v1320_v53  ;;  %1654 = vmatpush.xpose.msk.msra.mxu0 %vm1466_vm11, %v3104_v28  ;;  %v1335_v53 = vld [vmem:[%s3465_s1] sm:$0xff] }
 0x2b6   : > { %1440 = vst [vmem:[#allocation1 + $0x23] ss:$4 sm:$0xff] %v1321_v7  ;;  %v683_v63 = vpop.permute.xlu1 %682 }
 0x2b7   : > { %1443 = vst [vmem:[#allocation1] ss:$4 sm:$0xff] %v1322_v37  ;;  %v939_v47 = vpop.permute.xlu0 %938  ;;  %v1118_v18 = vsel %vm1092_vm6, %v2781_v52, %v683_v63 }
 0x2b8   : > { %v1203_v55 = vsel %vm1179_vm9, %v1174_v26, %v939_v47 }
 0x2b9   : > { %v1232_v9 = vsel %vm1208_vm10, %v1203_v55, 1.0  ;;  %1655 = vmatpush.xpose.msk.msra.mxu0 %vm1466_vm11, %v3065_v62  ;;  %v1147_v62 = vsel %vm1121_vm7, %v1118_v18, %v769_v56  ;;  %v858_v52 = vpop.permute.xlu2 %857 }
 0x2ba   : > { %v1323_v10 = vrot.slane %v1232_v9, 2  ;;  %v1324_v28 = vrot.slane %v1232_v9, 4  ;;  %1444 = vst [vmem:[#allocation1 + $0x1] ss:$4 sm:$0xff] %v1232_v9 }
 0x2bc   : > { %1445 = vst [vmem:[#allocation1 + $0x2] ss:$4 sm:$0xff] %v1323_v10 }
 0x2bd   : > { %1446 = vst [vmem:[#allocation1 + $0x3] ss:$4 sm:$0xff] %v1324_v28  ;;  %1656 = vmatpush.xpose.msk.msra.mxu0 %vm1466_vm11, %v3088_v27  ;;  %v1442_v31 = vld.sshfl [vmem:[#allocation1 + $0x20] sm:$0xff pattern:$0x73625140] }
 0x2be   : > { %v856_v30 = vpop.permute.xlu1 %855 }
 0x2bf   : > { %v685_v0 = vpop.permute.xlu0 %684  ;;  %v1176_v50 = vsel %vm1150_vm8, %v1147_v62, %v856_v30 }
 0x2c0   : > { %v1119_v27 = vsel %vm1092_vm6, %v2704_v3, %v685_v0 }
 0x2c1   : > { %1657 = vmatpush.xpose.msk.msra.mxu0 %vm1466_vm11, %v3018_v29  ;;  %v1148_v21 = vsel %vm1121_vm7, %v1119_v27, %v771_v32 }
 0x2c2   : > { %v1177_v3 = vsel %vm1150_vm8, %v1148_v21, %v858_v52 }
 0x2c4   : > { %v3389_v19 = vld.sshfl [vmem:[#allocation1] sm:$0xff pattern:$0x73625140] }
 0x2c5   : > { %1658 = vmatpush.xpose.msk.msra.mxu0 %vm1466_vm11, %v3007_v22 }
 0x2c6   : > { %v681_v57 = vpop.permute.xlu1 %680 }
 0x2c7   : > { %v943_v42 = vpop.permute.xlu0 %942  ;;  %v1117_v49 = vsel %vm1092_vm6, %v2784_v4, %v681_v57 }
 0x2c8   : > { %v1205_v35 = vsel %vm1179_vm9, %v1176_v50, %v943_v42 }
 0x2c9   : > { %v1234_v29 = vsel %vm1208_vm10, %v1205_v35, 1.0  ;;  %1659 = vmatpush.xpose.msk.msra.mxu0 %vm1466_vm11, %v2984_v8  ;;  %v854_v8 = vpop.permute.xlu2 %853 }
 0x2ca   : > { %v1328_v22 = vrot.slane %v1234_v29, 2  ;;  %v1329_v41 = vrot.slane %v1234_v29, 4  ;;  %1453 = vst [vmem:[#allocation1] ss:$4 sm:$0xff] %v1234_v29 }
 0x2cc   : > { %1454 = vst [vmem:[#allocation1 + $0x1] ss:$4 sm:$0xff] %v1328_v22 }
 0x2cd   : > { %1455 = vst [vmem:[#allocation1 + $0x2] ss:$4 sm:$0xff] %v1329_v41  ;;  %1660 = vmatpush.xpose.msk.msra.mxu0 %vm1466_vm11, %v2969_v54 }
 0x2ce   : > { %v945_v59 = vpop.permute.xlu1 %944 }
 0x2cf   : > { %v1206_v43 = vsel %vm1179_vm9, %v1177_v3, %v945_v59  ;;  %v767_v39 = vpop.permute.xlu0 %766 }
 0x2d0   : > { %v1235_v2 = vsel %vm1208_vm10, %v1206_v43, 1.0  ;;  %v1146_v60 = vsel %vm1121_vm7, %v1117_v49, %v767_v39 }
 0x2d1   : > { %1456 = vst [vmem:[#allocation1 + $0x3] ss:$4 sm:$0xff] %v1235_v2  ;;  %1661 = vmatpush.xpose.msk.msra.mxu0 %vm1466_vm11, %v2902_v11  ;;  %v1175_v54 = vsel %vm1150_vm8, %v1146_v60, %v854_v8  ;;  %v773_v4 = vpop.permute.xlu2 %772  ;;  %v1330_v44 = vrot.slane %v1235_v2, 2  ;;  %v1331_v5 = vrot.slane %v1235_v2, 4 }
 0x2d4   : > { %1662 = vmatmul.msk.f32.vlgmr.msra.gmra.mxu0 %vm1466_vm11, %v1335_v53 }
 0x2d6   : > { %v687_v40 = vpop.permute.xlu1 %686 }
 0x2d7   : > { %v941_v48 = vpop.permute.xlu0 %940  ;;  %v1120_v11 = vsel %vm1092_vm6, %v2800_v6, %v687_v40  ;;  %v1332_v6 = vrot.slane %v1235_v2, 6 }
 0x2d8   : > { %v1204_v12 = vsel %vm1179_vm9, %v1175_v54, %v941_v48  ;;  %v1149_v23 = vsel %vm1121_vm7, %v1120_v11, %v773_v4  ;;  %v1461_v45 = vld.sshfl [vmem:[#allocation1] sm:$0xff pattern:$0x73625140] }
 0x2d9   : > { %v1233_v38 = vsel %vm1208_vm10, %v1204_v12, 1.0 }
 0x2da   : > { %v1325_v13 = vrot.slane %v1233_v38, 2  ;;  %v1326_v25 = vrot.slane %v1233_v38, 4  ;;  %v1327_v14 = vrot.slane %v1233_v38, 6  ;;  %1447 = vst [vmem:[#allocation1 + $0x20] ss:$4 sm:$0xff] %v1233_v38 }
 0x2dc   : > { %1448 = vst [vmem:[#allocation1 + $0x21] ss:$4 sm:$0xff] %v1325_v13 }
 0x2dd   : > { %1449 = vst [vmem:[#allocation1 + $0x22] ss:$4 sm:$0xff] %v1326_v25 }
 0x2de   : > { %1450 = vst [vmem:[#allocation1 + $0x23] ss:$4 sm:$0xff] %v1327_v14  ;;  %v947_v24 = vpop.permute.xlu1 %946 }
 0x2df   : > { %v860_v1 = vpop.permute.xlu0 %859 }
 0x2e0   : > { %v1178_v20 = vsel %vm1150_vm8, %v1149_v23, %v860_v1 }
 0x2e1   : > { %v1207_v36 = vsel %vm1179_vm9, %v1178_v20, %v947_v24 }
 0x2e2   : > { %v1236_v16 = vsel %vm1208_vm10, %v1207_v36, 1.0 }
 0x2e3   : > { %v1333_v61 = vrot.slane %v1236_v16, 2  ;;  %v1334_v33 = vrot.slane %v1236_v16, 4 }
 0x2e5   : > { %v1452_v34 = vld.sshfl [vmem:[#allocation1 + $0x20] sm:$0xff pattern:$0x73625140]  ;;  %1463 = vst [vmem:[#allocation1] ss:$4 sm:$0xff] %v1333_v61 }
 0x2e6   : > { %1457 = vst [vmem:[#allocation1 + $0x20] ss:$4 sm:$0xff] %v1330_v44 }
 0x2e7   : > { %1458 = vst [vmem:[#allocation1 + $0x21] ss:$4 sm:$0xff] %v1331_v5 }
 0x2e8   : > { %1459 = vst [vmem:[#allocation1 + $0x22] ss:$4 sm:$0xff] %v1332_v6 }
 0x2e9   : > { %1460 = vst [vmem:[#allocation1 + $0x23] ss:$4 sm:$0xff] %v1236_v16 }
 0x2ea   : > { %1464 = vst [vmem:[#allocation1 + $0x1] ss:$4 sm:$0xff] %v1334_v33 }
 0x2f0   : > { %v1462_v7 = vld.sshfl [vmem:[#allocation1 + $0x20] sm:$0xff pattern:$0x73625140] }
 0x2f1   : > { %v1465_v17 = vld.sshfl [vmem:[#allocation1] sm:$0xff pattern:$0x73625140] }
 0x2f2   : > { %1663 = vmatpush.xpose.msk.msra.mxu1 %vm1466_vm11, %v1465_v17 }
 0x2f6   : > { %1664 = vmatpush.xpose.msk.msra.mxu1 %vm1466_vm11, %v1462_v7 }
 0x2fa   : > { %1665 = vmatpush.xpose.msk.msra.mxu1 %vm1466_vm11, %v1461_v45 }
 0x2fe   : > { %1666 = vmatpush.xpose.msk.msra.mxu1 %vm1466_vm11, %v1452_v34 }
 0x302   : > { %1667 = vmatpush.xpose.msk.msra.mxu1 %vm1466_vm11, %v3389_v19 }
 0x306   : > { %1668 = vmatpush.xpose.msk.msra.mxu1 %vm1466_vm11, %v1442_v31 }
 0x30a   : > { %1669 = vmatpush.xpose.msk.msra.mxu1 %vm1466_vm11, %v3369_v15 }
 0x30e   : > { %1670 = vmatpush.xpose.msk.msra.mxu1 %vm1466_vm11, %v3352_v51 }
 0x312   : > { %1671 = vmatpush.xpose.msk.msra.mxu1 %vm1466_vm11, %v3341_v58 }
 0x315   : > { %1672 = vmatmul.msk.f32.vlgmr.msra.gmra.mxu1 %vm1466_vm11, %v1335_v53 }
 0x351   : > { %v1537_v37 = vpop.f32.mrf.mxu0 }
 0x352   : > { %1560 = vst [vmem:[%s136_s16] sm:$0xff] %v1537_v37 }
 0x392   : > { %v1557_v51 = vpop.f32.mrf.mxu1 }
 0x393   : > { %1562 = vst.msk [vmem:[%s136_s16 + $0x8] sm:$0xff] %vm1561_vm12, %v1557_v51 }
 0x394   : > { %1777 = shalt.err (!%p1774_p3)
}
 0x395   : > { %1680 = dma.vmem_to_hbm [thread:$0]  (%p1875_p5), %s1578_s24, 256, %s1580_s25, %s1564_s26  }
 0x396 PF: > { %p1686_p4 = scmp.ge.s32.totalorder %s1812_s12, 2  ;;  %s1591_s5 = sand.u32 1, %s1800_s9  }
 0x397   : > { %s1592_s6 = scalar_lea.sflag [#allocation3], %s1591_s5 }
 0x398   : > { %p1683_p7 = pnand %p1686_p4, %p1879_p6 }
 0x39a   : > { %p1684_p8 = pneg %p1683_p7 }
 0x39c   : > { %1795 = dma.done.wait (%p1684_p8), %s1592_s6, 256  }
 0x39d   : > { %1797 = vsyncadd (%p1684_p8), %s1592_s6, 4294967040  ;;  %p12_p9 = scmp.ge.s32.totalorder %s1862_s15, 4   ;;  %s3762_s9 = smov %s1804_s10 }
 0x39e   : > { %s3763_s10 = smov %s1808_s11  ;;  %s3764_s11 = smov %s1873_s18 }
 0x39f   : > { %s3765_s12 = smov %s1862_s15  ;;  %14 = sbr.rel (!%p12_p9) target bundleno = 3 (0x3), region = 70 }
 0x3a4   :  { %1598 = vsyncpa [#allocation3], 1 }
 0x3a5   :  { %1600 = vsyncpa [#allocation3 + $0x1], 1 }

</bundles_post_ra>
